<compile_context>
chip_gen: v5e
topology: v5e:2x2
jax: 0.10.0
libtpu: 0.0.40
codegen_flags: <defaults>
</compile_context>

<pallas_src>
import functools

import jax
import jax.numpy as jnp
from jax import lax
from jax.experimental import pallas as pl
from jax.experimental.pallas import tpu as pltpu

EPS = 1e-5
KH = KW = 3          # kernel_size=3, stride=1, padding=1 (fixed by the module)
LANE = 128


def _round_up(x, m):
    return ((x + m - 1) // m) * m


@functools.lru_cache(maxsize=None)
def _vmem_capacity_bytes():
    try:
        return int(pltpu.get_tpu_info().vmem_capacity_bytes)
    except Exception:
        return 64 * 1024 * 1024      # v7x per-core VMEM: safe lower bound


def _pick_th(H, est_bytes, budget):
    """Smallest even divisor >= 8 of H whose pass-1 working set fits the VMEM budget
    (keeps halo overhead <= 1.25x while staying v7x-safe); falls back gracefully."""
    evens = [t for t in range(2, H + 1, 2) if H % t == 0]
    cands = [t for t in evens if t >= 8] + list(reversed([t for t in evens if t < 8]))
    for t in cands:
        if est_bytes(t) <= budget:
            return t
    # TODO(synk): for huge Cin*Cout layers add a Cout grid axis instead of shrinking TH.
    if evens:
        return evens[0]
    return H          # odd H: single tile per image, halo folded into the xa block


def _pick_row_tile(rows, cap):
    """Largest multiple-of-8 divisor of `rows` that is <= cap (pass-2 row tile)."""
    cap = max(8, min(cap, rows))
    if rows <= cap:
        return rows
    best = 0
    for t in range(8, cap + 1, 8):
        if rows % t == 0:
            best = t
    return best if best else rows


# ---------------------------------------------------------------------------
# Pass 1: conv (single K = 9*Cin_t MXU matmul per tile) + per-tile BN partials
# ---------------------------------------------------------------------------
def _conv_stats_kernel(xa_ref, xb_ref, w_ref, conv_ref, stats_ref, patch_ref, *, Wp):
    # xa_ref:    (1, rows_a, Cin_t)  TH*Wp flat rows of the tile (or the full padded
    #                                 image including the halo when the grid has G==1)
    # xb_ref:    (1, 2*Wp, Cin_t)    2-row bottom halo (dummy when G==1)
    # w_ref:     (K, Cout_p)         taps packed tightly along K, zero-padded to K
    # conv_ref:  (1, TH, W, Cout_p)  conv output tile (f32 or bf16)
    # stats_ref: (1, 1, 2, Cout_p)   per-tile [sum, sum_sq] (f32)
    # patch_ref: (TH*Wp, K)          persistent im2col scratch
    rows_a = xa_ref.shape[1]
    rows_b = xb_ref.shape[1]
    Cin_t = xa_ref.shape[2]
    _, TH, W, Cout_p = conv_ref.shape
    M, K = patch_ref.shape
    K_raw = KH * KW * Cin_t

    if K > K_raw:   # zero the K-padding lanes (only taken in the packed small-Cin mode)
        patch_ref[:, K_raw:K] = jnp.zeros((M, K - K_raw), patch_ref.dtype)

    # Write each shifted tap directly into its lane slice of the scratch.
    for kh in range(KH):
        for kw in range(KW):
            t = kh * KW + kw
            off = kh * Wp + kw
            c0 = t * Cin_t
            n_a = max(0, min(rows_a - off, M))
            if n_a > 0:
                patch_ref[0:n_a, c0:c0 + Cin_t] = xa_ref[0, off:off + n_a, :]
            b0 = max(0, off - rows_a)
            n_b = min(M - n_a, rows_b - b0)
            # Any (<=2) unwritten trailing patch rows only feed conv columns >= W,
            # which are sliced away below, so stale scratch there is harmless.
            if n_b > 0:
                patch_ref[n_a:n_a + n_b, c0:c0 + Cin_t] = xb_ref[0, b0:b0 + n_b, :]

    acc = jnp.dot(patch_ref[...], w_ref[...], preferred_element_type=jnp.float32)
    conv = acc.reshape(TH, Wp, Cout_p)[:, :W, :]            # drop halo / pad columns
    conv_ref[0] = conv.astype(conv_ref.dtype)

    s1 = jnp.sum(conv, axis=(0, 1)).reshape(1, Cout_p)
    s2 = jnp.sum(conv * conv, axis=(0, 1)).reshape(1, Cout_p)
    stats_ref[...] = jnp.concatenate([s1, s2], axis=0).reshape(1, 1, 2, Cout_p)


# ---------------------------------------------------------------------------
# Pass 2: y = conv * scale + bias, then ReLU  (lane-dense, HBM-roofline tiles)
# ---------------------------------------------------------------------------
def _bn_relu_kernel(conv_ref, scale_ref, bias_ref, o_ref):
    y = conv_ref[...].astype(jnp.float32) * scale_ref[...] + bias_ref[...]
    o_ref[...] = jnp.maximum(y, 0.0).astype(o_ref.dtype)


@functools.partial(jax.jit, static_argnames=("compute_dtype",))
def conv_bn_relu_nhwc(x_nhwc, w_oihw, gamma, beta, *, compute_dtype=None):
    """Conv2d(3x3,s1,p1,no bias) -> BatchNorm2d(batch stats) -> ReLU.  NHWC in/out."""
    N, H, W, Cin = x_nhwc.shape
    Cout = w_oihw.shape[0]
    if w_oihw.shape != (Cout, Cin, KH, KW):
        raise ValueError(f"expected OIHW weights (Cout, {Cin}, 3, 3), got {w_oihw.shape}")
    out_dtype = x_nhwc.dtype
    cd = jnp.dtype(x_nhwc.dtype if compute_dtype is None else compute_dtype)
    conv_dtype = jnp.dtype(jnp.float32) if cd == jnp.dtype(jnp.float32) else jnp.dtype(jnp.bfloat16)
    c_item = cd.itemsize
    conv_item = conv_dtype.itemsize
    out_item = jnp.dtype(out_dtype).itemsize

    # --- static geometry ------------------------------------------------------
    Cin_t = Cin if Cin < LANE else _round_up(Cin, LANE)   # tight tap packing for small Cin
    Cout_p = _round_up(Cout, LANE)                        # lane-dense conv/BN output
    Wp = _round_up(W + 2, 8)                              # conv halo + sublane alignment
    K_raw = KH * KW * Cin_t
    K = _round_up(K_raw, LANE)

    cap = _vmem_capacity_bytes()

    def est_bytes(th):
        m = th * Wp
        return (2 * (m + 2 * Wp) * Cin_t * c_item          # xa + xb blocks (double buffered)
                + 2 * K * Cout_p * c_item                   # weight block
                + 2 * th * W * Cout_p * conv_item           # conv-out block
                + 2 * 2 * Cout_p * 4                        # stats block
                + m * K * c_item                            # im2col patch scratch
                + 2 * m * Cout_p * 4)                       # matmul result temporaries

    TH = _pick_th(H, est_bytes, int(0.4 * cap))
    G = H // TH
    rows_a = (TH + 2) * Wp if G == 1 else TH * Wp          # G == 1: halo lives in xa

    # --- glue: pad + flatten rows (plain JAX; reshapes are contiguous/bitcast) -
    x_pad = jnp.pad(x_nhwc, ((0, 0), (1, 1), (1, Wp - W - 1), (0, Cin_t - Cin)))
    x_flat = x_pad.reshape(N, (H + 2) * Wp, Cin_t).astype(cd)

    w_t = jnp.transpose(w_oihw, (2, 3, 1, 0))               # (KH, KW, Cin, Cout)
    w_t = jnp.pad(w_t, ((0, 0), (0, 0), (0, Cin_t - Cin), (0, Cout_p - Cout)))
    w_flat = jnp.pad(w_t.reshape(K_raw, Cout_p), ((0, K - K_raw), (0, 0))).astype(cd)

    if G == 1:
        xb_map = lambda n, h: (n, 0, 0)                      # dummy halo block (unused)
    else:
        half = TH // 2
        xb_map = lambda n, h: (n, (h + 1) * half, 0)         # 2-row halo below tile h

    cost1 = pl.CostEstimate(
        flops=int(2 * N * G * TH * Wp * K * Cout_p),
        transcendentals=0,
        bytes_accessed=int(N * (H + 2 * G) * Wp * Cin_t * c_item + K * Cout_p * c_item
                           + N * H * W * Cout_p * conv_item + N * G * 2 * Cout_p * 4))

    conv_out, stats = pl.pallas_call(
        functools.partial(_conv_stats_kernel, Wp=Wp),
        out_shape=(jax.ShapeDtypeStruct((N, H, W, Cout_p), conv_dtype),
                   jax.ShapeDtypeStruct((N, G, 2, Cout_p), jnp.float32)),
        grid=(N, G),
        in_specs=[
            pl.BlockSpec((1, rows_a, Cin_t), lambda n, h: (n, h, 0)),
            pl.BlockSpec((1, 2 * Wp, Cin_t), xb_map),
            pl.BlockSpec((K, Cout_p), lambda n, h: (0, 0)),
        ],
        out_specs=(
            pl.BlockSpec((1, TH, W, Cout_p), lambda n, h: (n, h, 0, 0)),
            pl.BlockSpec((1, 1, 2, Cout_p), lambda n, h: (n, h, 0, 0)),
        ),
        scratch_shapes=[pltpu.VMEM((TH * Wp, K), cd)],
        compiler_params=pltpu.CompilerParams(
            dimension_semantics=("parallel", "parallel"),
            vmem_limit_bytes=int(0.8 * cap)),
        cost_estimate=cost1,
    )(x_flat, x_flat, w_flat)

    # --- tiny JAX reduction: partial sums -> per-channel scale / bias ----------
    tot = jnp.sum(stats, axis=(0, 1))                        # (2, Cout_p)
    cnt = float(N * H * W)
    mean = tot[0] / cnt
    # E[x^2]-E[x]^2 in f32 is adequate for conv activations (see review note).
    var = jnp.maximum(tot[1] / cnt - mean * mean, 0.0)       # biased (training-mode BN)
    inv_std = lax.rsqrt(var + EPS)
    gamma_p = jnp.pad(gamma.astype(jnp.float32), (0, Cout_p - Cout))
    beta_p = jnp.pad(beta.astype(jnp.float32), (0, Cout_p - Cout))
    scale = (gamma_p * inv_std).reshape(1, Cout_p)
    bias = (beta_p - mean * gamma_p * inv_std).reshape(1, Cout_p)

    # --- pass 2: elementwise normalize + ReLU over large flattened row tiles ---
    R = N * H * W
    conv_flat = conv_out.reshape(R, Cout_p)
    row_cap = max(8, ((4 << 20) // (Cout_p * (conv_item + out_item))) // 8 * 8)
    TR = _pick_row_tile(R, row_cap)
    cost2 = pl.CostEstimate(flops=int(3 * R * Cout_p), transcendentals=0,
                            bytes_accessed=int(R * Cout_p * (conv_item + out_item)))
    out_flat = pl.pallas_call(
        _bn_relu_kernel,
        out_shape=jax.ShapeDtypeStruct((R, Cout_p), out_dtype),
        grid=(R // TR,),
        in_specs=[pl.BlockSpec((TR, Cout_p), lambda r: (r, 0)),
                  pl.BlockSpec((1, Cout_p), lambda r: (0, 0)),
                  pl.BlockSpec((1, Cout_p), lambda r: (0, 0))],
        out_specs=pl.BlockSpec((TR, Cout_p), lambda r: (r, 0)),
        compiler_params=pltpu.CompilerParams(dimension_semantics=("parallel",)),
        cost_estimate=cost2,
    )(conv_flat, scale, bias)

    return out_flat.reshape(N, H, W, Cout_p)[..., :Cout]


@functools.partial(jax.jit, static_argnames=("compute_dtype",))
def conv_bn_relu(x_nchw, w_oihw, gamma, beta, *, compute_dtype=None):
    """NCHW wrapper kept for PyTorch parity.  When chaining ConvBNReLU layers prefer
    conv_bn_relu_nhwc and keep activations NHWC to avoid these two full-tensor
    HBM transpose round trips."""
    x_nhwc = jnp.transpose(x_nchw, (0, 2, 3, 1))
    out_nhwc = conv_bn_relu_nhwc(x_nhwc, w_oihw, gamma, beta, compute_dtype=compute_dtype)
    return jnp.transpose(out_nhwc, (0, 3, 1, 2))


def reference(x_nchw, w_oihw, gamma, beta):
    conv = lax.conv_general_dilated(
        x_nchw, w_oihw, window_strides=(1, 1), padding=((1, 1), (1, 1)),
        dimension_numbers=("NCHW", "OIHW", "NCHW"),
        precision=lax.Precision.HIGHEST)
    mean = jnp.mean(conv, axis=(0, 2, 3), keepdims=True)
    var = jnp.mean((conv - mean) ** 2, axis=(0, 2, 3), keepdims=True)
    y = (conv - mean) * lax.rsqrt(var + EPS)
    y = y * gamma.reshape(1, -1, 1, 1) + beta.reshape(1, -1, 1, 1)
    return jnp.maximum(y, 0.0)


if __name__ == "__main__":
    key = jax.random.PRNGKey(0)
    kx, kw_, kg, kb = jax.random.split(key, 4)

    # Config A: small-Cin packed-K path, tiled H with the 2-row halo (G = 2).
    N, Cin, Cout, H, W = 2, 4, 8, 16, 16
    x = jax.random.normal(kx, (N, Cin, H, W), dtype=jnp.float32)
    w = jax.random.normal(kw_, (Cout, Cin, KH, KW), dtype=jnp.float32) / jnp.sqrt(Cin * KH * KW)
    gamma = 1.0 + 0.1 * jax.random.normal(kg, (Cout,), dtype=jnp.float32)
    beta = 0.1 * jax.random.normal(kb, (Cout,), dtype=jnp.float32)

    ref = jax.block_until_ready(reference(x, w, gamma, beta))

    # f32-operand MXU path: must match the f32 reference tightly.
    out = jax.block_until_ready(conv_bn_relu(x, w, gamma, beta))
    assert out.shape == (N, Cout, H, W), out.shape
    err = float(jnp.max(jnp.abs(out - ref)))
    assert err < 1e-4, err

    # bf16-operand / f32-accumulate MXU path (v6e/v7x fast path): loose check.
    out_bf16 = jax.block_until_ready(
        conv_bn_relu(x, w, gamma, beta, compute_dtype=jnp.bfloat16))
    err_bf16 = float(jnp.max(jnp.abs(out_bf16 - ref)))
    assert err_bf16 < 1e-1, err_bf16

    # Config B: channel-padded path (Cin >= 128) with odd H/W -> single-tile halo-in-xa.
    N2, Cin2, Cout2, H2, W2 = 1, 128, 8, 7, 9
    kx2, kw2 = jax.random.split(kx)
    x2 = jax.random.normal(kx2, (N2, Cin2, H2, W2), dtype=jnp.float32)
    w2 = jax.random.normal(kw2, (Cout2, Cin2, KH, KW), dtype=jnp.float32) / jnp.sqrt(Cin2 * KH * KW)
    ref2 = jax.block_until_ready(reference(x2, w2, gamma, beta))
    out2 = jax.block_until_ready(conv_bn_relu(x2, w2, gamma, beta))
    assert out2.shape == (N2, Cout2, H2, W2), out2.shape
    err2 = float(jnp.max(jnp.abs(out2 - ref2)))
    assert err2 < 5e-4, err2

    print("KERNEL_OK")
</pallas_src>

<mosaic_0001>
module attributes {stable_mosaic.version = 11 : i64} {
  func.func @_bn_relu_kernel(%arg0: i32, %arg1: memref<512x128xf32, #tpu.memory_space<vmem>>, %arg2: memref<1x128xf32, #tpu.memory_space<vmem>>, %arg3: memref<1x128xf32, #tpu.memory_space<vmem>>, %arg4: memref<512x128xf32, #tpu.memory_space<vmem>>) attributes {dimension_semantics = [#tpu.dimension_semantics<parallel>], iteration_bounds = array<i64: 1>, scalar_prefetch = 0 : i64, scratch_operands = 0 : i64, tpu.core_type = #tpu.core_type<tc>, window_params = [{transform_indices = @transform_0, window_bounds = array<i64: 512, 128>}, {pipeline_mode = #tpu.pipeline_mode<synchronous>, transform_indices = @transform_1, window_bounds = array<i64: 1, 128>}, {pipeline_mode = #tpu.pipeline_mode<synchronous>, transform_indices = @transform_2, window_bounds = array<i64: 1, 128>}, {transform_indices = @transform_3, window_bounds = array<i64: 512, 128>}]} {
    %c0 = arith.constant 0 : index
    %c0_0 = arith.constant 0 : index
    %0 = vector.load %arg1[%c0, %c0_0] : memref<512x128xf32, #tpu.memory_space<vmem>>, vector<512x128xf32>
    %c0_1 = arith.constant 0 : index
    %c0_2 = arith.constant 0 : index
    %1 = vector.load %arg2[%c0_1, %c0_2] : memref<1x128xf32, #tpu.memory_space<vmem>>, vector<1x128xf32>
    %2 = vector.broadcast %1 : vector<1x128xf32> to vector<512x128xf32>
    %3 = arith.mulf %0, %2 : vector<512x128xf32>
    %c0_3 = arith.constant 0 : index
    %c0_4 = arith.constant 0 : index
    %4 = vector.load %arg3[%c0_3, %c0_4] : memref<1x128xf32, #tpu.memory_space<vmem>>, vector<1x128xf32>
    %5 = vector.broadcast %4 : vector<1x128xf32> to vector<512x128xf32>
    %6 = arith.addf %3, %5 : vector<512x128xf32>
    %cst = arith.constant 0.000000e+00 : f32
    %7 = vector.broadcast %cst : f32 to vector<512x128xf32>
    %8 = arith.maximumf %6, %7 : vector<512x128xf32>
    %c0_5 = arith.constant 0 : index
    %c0_6 = arith.constant 0 : index
    %9 = vector.load %arg4[%c0_5, %c0_6] : memref<512x128xf32, #tpu.memory_space<vmem>>, vector<512x128xf32>
    tpu.vector_store %arg4[%c0_5, %c0_6], %8 {strides = array<i32>} : memref<512x128xf32, #tpu.memory_space<vmem>>, vector<512x128xf32>,
    return
  }
  func.func @transform_0(%arg0: i32) -> (i32, i32) {
    %c0_i32 = arith.constant 0 : i32
    %c0_i32_0 = arith.constant 0 : i32
    return %arg0, %c0_i32 : i32, i32
  }
  func.func @transform_1(%arg0: i32) -> (i32, i32) {
    %c0_i32 = arith.constant 0 : i32
    %c0_i32_0 = arith.constant 0 : i32
    %c0_i32_1 = arith.constant 0 : i32
    return %c0_i32, %c0_i32_0 : i32, i32
  }
  func.func @transform_2(%arg0: i32) -> (i32, i32) {
    %c0_i32 = arith.constant 0 : i32
    %c0_i32_0 = arith.constant 0 : i32
    %c0_i32_1 = arith.constant 0 : i32
    return %c0_i32, %c0_i32_0 : i32, i32
  }
  func.func @transform_3(%arg0: i32) -> (i32, i32) {
    %c0_i32 = arith.constant 0 : i32
    %c0_i32_0 = arith.constant 0 : i32
    return %arg0, %c0_i32 : i32, i32
  }
}

module attributes {stable_mosaic.version = 11 : i64} {
  func.func @_conv_stats_kernel(%arg0: i32, %arg1: i32, %arg2: memref<1x192x4xf32, #tpu.memory_space<vmem>>, %arg3: memref<1x48x4xf32, #tpu.memory_space<vmem>>, %arg4: memref<128x128xf32, #tpu.memory_space<vmem>>, %arg5: memref<1x8x16x128xf32, #tpu.memory_space<vmem>>, %arg6: memref<1x1x2x128xf32, #tpu.memory_space<vmem>>, %arg7: memref<192x128xf32, #tpu.memory_space<vmem>>) attributes {dimension_semantics = [#tpu.dimension_semantics<parallel>, #tpu.dimension_semantics<parallel>], iteration_bounds = array<i64: 2, 2>, scalar_prefetch = 0 : i64, scratch_operands = 1 : i64, tpu.core_type = #tpu.core_type<tc>, window_params = [{transform_indices = @transform_0, window_bounds = array<i64: 1, 192, 4>}, {transform_indices = @transform_1, window_bounds = array<i64: 1, 48, 4>}, {pipeline_mode = #tpu.pipeline_mode<synchronous>, transform_indices = @transform_2, window_bounds = array<i64: 128, 128>}, {transform_indices = @transform_3, window_bounds = array<i64: 1, 8, 16, 128>}, {transform_indices = @transform_4, window_bounds = array<i64: 1, 1, 2, 128>}]} {
    %cst = arith.constant 0.000000e+00 : f32
    %0 = vector.broadcast %cst : f32 to vector<192x92xf32>
    %c0 = arith.constant 0 : index
    %c36 = arith.constant 36 : index
    %1 = vector.load %arg7[%c0, %c36] : memref<192x128xf32, #tpu.memory_space<vmem>>, vector<192x92xf32>
    tpu.vector_store %arg7[%c0, %c36], %0 {strides = array<i32>} : memref<192x128xf32, #tpu.memory_space<vmem>>, vector<192x92xf32>,
    %c0_0 = arith.constant 0 : index
    %c0_1 = arith.constant 0 : index
    %c0_2 = arith.constant 0 : index
    %2 = vector.load %arg2[%c0_0, %c0_1, %c0_2] : memref<1x192x4xf32, #tpu.memory_space<vmem>>, vector<1x192x4xf32>
    %3 = vector.shape_cast %2 : vector<1x192x4xf32> to vector<192x4xf32>
    %c0_3 = arith.constant 0 : index
    %c0_4 = arith.constant 0 : index
    %4 = vector.load %arg7[%c0_3, %c0_4] : memref<192x128xf32, #tpu.memory_space<vmem>>, vector<192x4xf32>
    tpu.vector_store %arg7[%c0_3, %c0_4], %3 {strides = array<i32>} : memref<192x128xf32, #tpu.memory_space<vmem>>, vector<192x4xf32>,
    %c0_5 = arith.constant 0 : index
    %c1 = arith.constant 1 : index
    %c0_6 = arith.constant 0 : index
    %5 = vector.load %arg2[%c0_5, %c1, %c0_6] : memref<1x192x4xf32, #tpu.memory_space<vmem>>, vector<1x191x4xf32>
    %6 = vector.shape_cast %5 : vector<1x191x4xf32> to vector<191x4xf32>
    %c0_7 = arith.constant 0 : index
    %c4 = arith.constant 4 : index
    %7 = vector.load %arg7[%c0_7, %c4] : memref<192x128xf32, #tpu.memory_space<vmem>>, vector<191x4xf32>
    tpu.vector_store %arg7[%c0_7, %c4], %6 {strides = array<i32>} : memref<192x128xf32, #tpu.memory_space<vmem>>, vector<191x4xf32>,
    %c0_8 = arith.constant 0 : index
    %c0_9 = arith.constant 0 : index
    %c0_10 = arith.constant 0 : index
    %8 = vector.load %arg3[%c0_8, %c0_9, %c0_10] : memref<1x48x4xf32, #tpu.memory_space<vmem>>, vector<1x1x4xf32>
    %9 = vector.shape_cast %8 : vector<1x1x4xf32> to vector<1x4xf32>
    %c191 = arith.constant 191 : index
    %c4_11 = arith.constant 4 : index
    %10 = vector.load %arg7[%c191, %c4_11] : memref<192x128xf32, #tpu.memory_space<vmem>>, vector<1x4xf32>
    tpu.vector_store %arg7[%c191, %c4_11], %9 {strides = array<i32>} : memref<192x128xf32, #tpu.memory_space<vmem>>, vector<1x4xf32>,
    %c0_12 = arith.constant 0 : index
    %c2 = arith.constant 2 : index
    %c0_13 = arith.constant 0 : index
    %11 = vector.load %arg2[%c0_12, %c2, %c0_13] : memref<1x192x4xf32, #tpu.memory_space<vmem>>, vector<1x190x4xf32>
    %12 = vector.shape_cast %11 : vector<1x190x4xf32> to vector<190x4xf32>
    %c0_14 = arith.constant 0 : index
    %c8 = arith.constant 8 : index
    %13 = vector.load %arg7[%c0_14, %c8] : memref<192x128xf32, #tpu.memory_space<vmem>>, vector<190x4xf32>
    tpu.vector_store %arg7[%c0_14, %c8], %12 {strides = array<i32>} : memref<192x128xf32, #tpu.memory_space<vmem>>, vector<190x4xf32>,
    %c0_15 = arith.constant 0 : index
    %c0_16 = arith.constant 0 : index
    %c0_17 = arith.constant 0 : index
    %14 = vector.load %arg3[%c0_15, %c0_16, %c0_17] : memref<1x48x4xf32, #tpu.memory_space<vmem>>, vector<1x2x4xf32>
    %15 = vector.shape_cast %14 : vector<1x2x4xf32> to vector<2x4xf32>
    %c190 = arith.constant 190 : index
    %c8_18 = arith.constant 8 : index
    %16 = vector.load %arg7[%c190, %c8_18] : memref<192x128xf32, #tpu.memory_space<vmem>>, vector<2x4xf32>
    tpu.vector_store %arg7[%c190, %c8_18], %15 {strides = array<i32>} : memref<192x128xf32, #tpu.memory_space<vmem>>, vector<2x4xf32>,
    %c0_19 = arith.constant 0 : index
    %c24 = arith.constant 24 : index
    %c0_20 = arith.constant 0 : index
    %17 = vector.load %arg2[%c0_19, %c24, %c0_20] : memref<1x192x4xf32, #tpu.memory_space<vmem>>, vector<1x168x4xf32>
    %18 = vector.shape_cast %17 : vector<1x168x4xf32> to vector<168x4xf32>
    %c0_21 = arith.constant 0 : index
    %c12 = arith.constant 12 : index
    %19 = vector.load %arg7[%c0_21, %c12] : memref<192x128xf32, #tpu.memory_space<vmem>>, vector<168x4xf32>
    tpu.vector_store %arg7[%c0_21, %c12], %18 {strides = array<i32>} : memref<192x128xf32, #tpu.memory_space<vmem>>, vector<168x4xf32>,
    %c0_22 = arith.constant 0 : index
    %c0_23 = arith.constant 0 : index
    %c0_24 = arith.constant 0 : index
    %20 = vector.load %arg3[%c0_22, %c0_23, %c0_24] : memref<1x48x4xf32, #tpu.memory_space<vmem>>, vector<1x24x4xf32>
    %21 = vector.shape_cast %20 : vector<1x24x4xf32> to vector<24x4xf32>
    %c168 = arith.constant 168 : index
    %c12_25 = arith.constant 12 : index
    %22 = vector.load %arg7[%c168, %c12_25] : memref<192x128xf32, #tpu.memory_space<vmem>>, vector<24x4xf32>
    tpu.vector_store %arg7[%c168, %c12_25], %21 {strides = array<i32>} : memref<192x128xf32, #tpu.memory_space<vmem>>, vector<24x4xf32>,
    %c0_26 = arith.constant 0 : index
    %c25 = arith.constant 25 : index
    %c0_27 = arith.constant 0 : index
    %23 = vector.load %arg2[%c0_26, %c25, %c0_27] : memref<1x192x4xf32, #tpu.memory_space<vmem>>, vector<1x167x4xf32>
    %24 = vector.shape_cast %23 : vector<1x167x4xf32> to vector<167x4xf32>
    %c0_28 = arith.constant 0 : index
    %c16 = arith.constant 16 : index
    %25 = vector.load %arg7[%c0_28, %c16] : memref<192x128xf32, #tpu.memory_space<vmem>>, vector<167x4xf32>
    tpu.vector_store %arg7[%c0_28, %c16], %24 {strides = array<i32>} : memref<192x128xf32, #tpu.memory_space<vmem>>, vector<167x4xf32>,
    %c0_29 = arith.constant 0 : index
    %c0_30 = arith.constant 0 : index
    %c0_31 = arith.constant 0 : index
    %26 = vector.load %arg3[%c0_29, %c0_30, %c0_31] : memref<1x48x4xf32, #tpu.memory_space<vmem>>, vector<1x25x4xf32>
    %27 = vector.shape_cast %26 : vector<1x25x4xf32> to vector<25x4xf32>
    %c167 = arith.constant 167 : index
    %c16_32 = arith.constant 16 : index
    %28 = vector.load %arg7[%c167, %c16_32] : memref<192x128xf32, #tpu.memory_space<vmem>>, vector<25x4xf32>
    tpu.vector_store %arg7[%c167, %c16_32], %27 {strides = array<i32>} : memref<192x128xf32, #tpu.memory_space<vmem>>, vector<25x4xf32>,
    %c0_33 = arith.constant 0 : index
    %c26 = arith.constant 26 : index
    %c0_34 = arith.constant 0 : index
    %29 = vector.load %arg2[%c0_33, %c26, %c0_34] : memref<1x192x4xf32, #tpu.memory_space<vmem>>, vector<1x166x4xf32>
    %30 = vector.shape_cast %29 : vector<1x166x4xf32> to vector<166x4xf32>
    %c0_35 = arith.constant 0 : index
    %c20 = arith.constant 20 : index
    %31 = vector.load %arg7[%c0_35, %c20] : memref<192x128xf32, #tpu.memory_space<vmem>>, vector<166x4xf32>
    tpu.vector_store %arg7[%c0_35, %c20], %30 {strides = array<i32>} : memref<192x128xf32, #tpu.memory_space<vmem>>, vector<166x4xf32>,
    %c0_36 = arith.constant 0 : index
    %c0_37 = arith.constant 0 : index
    %c0_38 = arith.constant 0 : index
    %32 = vector.load %arg3[%c0_36, %c0_37, %c0_38] : memref<1x48x4xf32, #tpu.memory_space<vmem>>, vector<1x26x4xf32>
    %33 = vector.shape_cast %32 : vector<1x26x4xf32> to vector<26x4xf32>
    %c166 = arith.constant 166 : index
    %c20_39 = arith.constant 20 : index
    %34 = vector.load %arg7[%c166, %c20_39] : memref<192x128xf32, #tpu.memory_space<vmem>>, vector<26x4xf32>
    tpu.vector_store %arg7[%c166, %c20_39], %33 {strides = array<i32>} : memref<192x128xf32, #tpu.memory_space<vmem>>, vector<26x4xf32>,
    %c0_40 = arith.constant 0 : index
    %c48 = arith.constant 48 : index
    %c0_41 = arith.constant 0 : index
    %35 = vector.load %arg2[%c0_40, %c48, %c0_41] : memref<1x192x4xf32, #tpu.memory_space<vmem>>, vector<1x144x4xf32>
    %36 = vector.shape_cast %35 : vector<1x144x4xf32> to vector<144x4xf32>
    %c0_42 = arith.constant 0 : index
    %c24_43 = arith.constant 24 : index
    %37 = vector.load %arg7[%c0_42, %c24_43] : memref<192x128xf32, #tpu.memory_space<vmem>>, vector<144x4xf32>
    tpu.vector_store %arg7[%c0_42, %c24_43], %36 {strides = array<i32>} : memref<192x128xf32, #tpu.memory_space<vmem>>, vector<144x4xf32>,
    %c0_44 = arith.constant 0 : index
    %c0_45 = arith.constant 0 : index
    %c0_46 = arith.constant 0 : index
    %38 = vector.load %arg3[%c0_44, %c0_45, %c0_46] : memref<1x48x4xf32, #tpu.memory_space<vmem>>, vector<1x48x4xf32>
    %39 = vector.shape_cast %38 : vector<1x48x4xf32> to vector<48x4xf32>
    %c144 = arith.constant 144 : index
    %c24_47 = arith.constant 24 : index
    %40 = vector.load %arg7[%c144, %c24_47] : memref<192x128xf32, #tpu.memory_space<vmem>>, vector<48x4xf32>
    tpu.vector_store %arg7[%c144, %c24_47], %39 {strides = array<i32>} : memref<192x128xf32, #tpu.memory_space<vmem>>, vector<48x4xf32>,
    %c0_48 = arith.constant 0 : index
    %c49 = arith.constant 49 : index
    %c0_49 = arith.constant 0 : index
    %41 = vector.load %arg2[%c0_48, %c49, %c0_49] : memref<1x192x4xf32, #tpu.memory_space<vmem>>, vector<1x143x4xf32>
    %42 = vector.shape_cast %41 : vector<1x143x4xf32> to vector<143x4xf32>
    %c0_50 = arith.constant 0 : index
    %c28 = arith.constant 28 : index
    %43 = vector.load %arg7[%c0_50, %c28] : memref<192x128xf32, #tpu.memory_space<vmem>>, vector<143x4xf32>
    tpu.vector_store %arg7[%c0_50, %c28], %42 {strides = array<i32>} : memref<192x128xf32, #tpu.memory_space<vmem>>, vector<143x4xf32>,
    %c0_51 = arith.constant 0 : index
    %c0_52 = arith.constant 0 : index
    %c0_53 = arith.constant 0 : index
    %44 = vector.load %arg3[%c0_51, %c0_52, %c0_53] : memref<1x48x4xf32, #tpu.memory_space<vmem>>, vector<1x48x4xf32>
    %45 = vector.shape_cast %44 : vector<1x48x4xf32> to vector<48x4xf32>
    %c143 = arith.constant 143 : index
    %c28_54 = arith.constant 28 : index
    %46 = vector.load %arg7[%c143, %c28_54] : memref<192x128xf32, #tpu.memory_space<vmem>>, vector<48x4xf32>
    tpu.vector_store %arg7[%c143, %c28_54], %45 {strides = array<i32>} : memref<192x128xf32, #tpu.memory_space<vmem>>, vector<48x4xf32>,
    %c0_55 = arith.constant 0 : index
    %c50 = arith.constant 50 : index
    %c0_56 = arith.constant 0 : index
    %47 = vector.load %arg2[%c0_55, %c50, %c0_56] : memref<1x192x4xf32, #tpu.memory_space<vmem>>, vector<1x142x4xf32>
    %48 = vector.shape_cast %47 : vector<1x142x4xf32> to vector<142x4xf32>
    %c0_57 = arith.constant 0 : index
    %c32 = arith.constant 32 : index
    %49 = vector.load %arg7[%c0_57, %c32] : memref<192x128xf32, #tpu.memory_space<vmem>>, vector<142x4xf32>
    tpu.vector_store %arg7[%c0_57, %c32], %48 {strides = array<i32>} : memref<192x128xf32, #tpu.memory_space<vmem>>, vector<142x4xf32>,
    %c0_58 = arith.constant 0 : index
    %c0_59 = arith.constant 0 : index
    %c0_60 = arith.constant 0 : index
    %50 = vector.load %arg3[%c0_58, %c0_59, %c0_60] : memref<1x48x4xf32, #tpu.memory_space<vmem>>, vector<1x48x4xf32>
    %51 = vector.shape_cast %50 : vector<1x48x4xf32> to vector<48x4xf32>
    %c142 = arith.constant 142 : index
    %c32_61 = arith.constant 32 : index
    %52 = vector.load %arg7[%c142, %c32_61] : memref<192x128xf32, #tpu.memory_space<vmem>>, vector<48x4xf32>
    tpu.vector_store %arg7[%c142, %c32_61], %51 {strides = array<i32>} : memref<192x128xf32, #tpu.memory_space<vmem>>, vector<48x4xf32>,
    %c0_62 = arith.constant 0 : index
    %c0_63 = arith.constant 0 : index
    %53 = vector.load %arg7[%c0_62, %c0_63] : memref<192x128xf32, #tpu.memory_space<vmem>>, vector<192x128xf32>
    %c0_64 = arith.constant 0 : index
    %c0_65 = arith.constant 0 : index
    %54 = vector.load %arg4[%c0_64, %c0_65] : memref<128x128xf32, #tpu.memory_space<vmem>>, vector<128x128xf32>
    %cst_66 = arith.constant dense<0.000000e+00> : vector<192x128xf32>
    %55 = tpu.matmul %53, %54, %cst_66 {dimension_numbers = #tpu.dot_dimension_numbers<[1], [0], [0], [1], [0, 0, 1, 1], [], []>} : vector<192x128xf32>, vector<128x128xf32>, vector<192x128xf32> -> vector<192x128xf32>
    %56 = vector.shape_cast %55 : vector<192x128xf32> to vector<8x24x128xf32>
    %57 = vector.extract_strided_slice %56 {offsets = [0, 0, 0], sizes = [8, 16, 128], strides = [1, 1, 1]} : vector<8x24x128xf32> to vector<8x16x128xf32>
    %c0_67 = arith.constant 0 : index
    %c0_68 = arith.constant 0 : index
    %c0_69 = arith.constant 0 : index
    %c0_70 = arith.constant 0 : index
    %58 = vector.load %arg5[%c0_67, %c0_68, %c0_69, %c0_70] : memref<1x8x16x128xf32, #tpu.memory_space<vmem>>, vector<1x8x16x128xf32>
    %59 = vector.shape_cast %58 : vector<1x8x16x128xf32> to vector<8x16x128xf32>
    %60 = vector.shape_cast %57 : vector<8x16x128xf32> to vector<1x8x16x128xf32>
    tpu.vector_store %arg5[%c0_67, %c0_68, %c0_69, %c0_70], %60 {strides = array<i32>} : memref<1x8x16x128xf32, #tpu.memory_space<vmem>>, vector<1x8x16x128xf32>,
    %cst_71 = arith.constant dense<0.000000e+00> : vector<128xf32>
    %61 = vector.multi_reduction <add>, %57, %cst_71 [0, 1] : vector<8x16x128xf32> to vector<128xf32>
    %62 = vector.shape_cast %61 : vector<128xf32> to vector<1x128xf32>
    %63 = arith.mulf %57, %57 : vector<8x16x128xf32>
    %cst_72 = arith.constant dense<0.000000e+00> : vector<128xf32>
    %64 = vector.multi_reduction <add>, %63, %cst_72 [0, 1] : vector<8x16x128xf32> to vector<128xf32>
    %65 = vector.shape_cast %64 : vector<128xf32> to vector<1x128xf32>
    %66 = tpu.concatenate %62, %65 in 0 : vector<1x128xf32>, vector<1x128xf32> -> vector<2x128xf32>
    %67 = vector.shape_cast %66 : vector<2x128xf32> to vector<1x1x2x128xf32>
    %c0_73 = arith.constant 0 : index
    %c0_74 = arith.constant 0 : index
    %c0_75 = arith.constant 0 : index
    %c0_76 = arith.constant 0 : index
    %68 = vector.load %arg6[%c0_73, %c0_74, %c0_75, %c0_76] : memref<1x1x2x128xf32, #tpu.memory_space<vmem>>, vector<1x1x2x128xf32>
    tpu.vector_store %arg6[%c0_73, %c0_74, %c0_75, %c0_76], %67 {strides = array<i32>} : memref<1x1x2x128xf32, #tpu.memory_space<vmem>>, vector<1x1x2x128xf32>,
    return
  }
  func.func @transform_0(%arg0: i32, %arg1: i32) -> (i32, i32, i32) {
    %c0_i32 = arith.constant 0 : i32
    %c0_i32_0 = arith.constant 0 : i32
    return %arg0, %arg1, %c0_i32 : i32, i32, i32
  }
  func.func @transform_1(%arg0: i32, %arg1: i32) -> (i32, i32, i32) {
    %c1_i32 = arith.constant 1 : i32
    %0 = arith.addi %arg1, %c1_i32 : i32
    %c4_i32 = arith.constant 4 : i32
    %1 = arith.muli %0, %c4_i32 : i32
    %c0_i32 = arith.constant 0 : i32
    %c0_i32_0 = arith.constant 0 : i32
    return %arg0, %1, %c0_i32 : i32, i32, i32
  }
  func.func @transform_2(%arg0: i32, %arg1: i32) -> (i32, i32) {
    %c0_i32 = arith.constant 0 : i32
    %c0_i32_0 = arith.constant 0 : i32
    %c0_i32_1 = arith.constant 0 : i32
    return %c0_i32, %c0_i32_0 : i32, i32
  }
  func.func @transform_3(%arg0: i32, %arg1: i32) -> (i32, i32, i32, i32) {
    %c0_i32 = arith.constant 0 : i32
    %c0_i32_0 = arith.constant 0 : i32
    %c0_i32_1 = arith.constant 0 : i32
    return %arg0, %arg1, %c0_i32, %c0_i32_0 : i32, i32, i32, i32
  }
  func.func @transform_4(%arg0: i32, %arg1: i32) -> (i32, i32, i32, i32) {
    %c0_i32 = arith.constant 0 : i32
    %c0_i32_0 = arith.constant 0 : i32
    %c0_i32_1 = arith.constant 0 : i32
    return %arg0, %arg1, %c0_i32, %c0_i32_0 : i32, i32, i32, i32
  }
}

</mosaic_0001>

<bundles_post_ra>
// kernel: conv_bn_relu_nhwc.3
= control target key start
LH: loop header
LB: loop body
LE: loop exit
PB: predicated region body
PF: predicated region fallthrough
CT: control target
= control target key end

     0   :  { %s893_s0 = inlined_call_operand.vmem [shape: f32[512,128], index: 0, kind: input, shape index: {}]   ;;  %s894_s1 = inlined_call_operand.vmem [shape: f32[1,128], index: 1, kind: input, shape index: {}]   ;;  %s895_s2 = inlined_call_operand.vmem [shape: f32[1,128], index: 2, kind: input, shape index: {}]   ;;  %s896_s3 = inlined_call_operand.vmem [shape: f32[512,128], index: 3, kind: output, shape index: {}]  }
   0x1   :  { %v14_v0 = vld [vmem:[%s893_s0] sm:$0xff]  ;;  %v15_v3 = vld [vmem:[%s893_s0 + $0x8] sm:$0xff]  ;;  %v16_v6 = vld [vmem:[%s893_s0 + $0x10] sm:$0xff] }
   0x2   :  { %v374_v1 = vld [vmem:[%s894_s1] ss:$0 sm:$0xff]  ;;  %v17_v7 = vld [vmem:[%s893_s0 + $0x18] sm:$0xff]  ;;  %v19_v12 = vld [vmem:[%s893_s0 + $0x28] sm:$0xff] }
   0x3   :  { %v379_v2 = vld [vmem:[%s895_s2] ss:$0 sm:$0xff]  ;;  %v82_v4 = vmul.f32 %v374_v1, %v14_v0  ;;  %v83_v5 = vmul.f32 %v374_v1, %v15_v3  ;;  %v84_v9 = vmul.f32 %v374_v1, %v16_v6  ;;  %v85_v10 = vmul.f32 %v374_v1, %v17_v7  ;;  %v20_v13 = vld [vmem:[%s893_s0 + $0x30] sm:$0xff]  ;;  %v21_v14 = vld [vmem:[%s893_s0 + $0x38] sm:$0xff] }
   0x4   :  { %v18_v8 = vld [vmem:[%s893_s0 + $0x20] sm:$0xff]  ;;  %v87_v17 = vmul.f32 %v374_v1, %v19_v12  ;;  %v88_v18 = vmul.f32 %v374_v1, %v20_v13  ;;  %v89_v22 = vmul.f32 %v374_v1, %v21_v14  ;;  %v23_v24 = vld [vmem:[%s893_s0 + $0x48] sm:$0xff]  ;;  %v24_v29 = vld [vmem:[%s893_s0 + $0x50] sm:$0xff] }
   0x5   :  { %v86_v11 = vmul.f32 %v374_v1, %v18_v8  ;;  %v150_v15 = vadd.f32 %v379_v2, %v82_v4  ;;  %v151_v16 = vadd.f32 %v379_v2, %v83_v5  ;;  %v152_v19 = vadd.f32 %v379_v2, %v84_v9  ;;  %v22_v23 = vld [vmem:[%s893_s0 + $0x40] sm:$0xff]  ;;  %v25_v30 = vld [vmem:[%s893_s0 + $0x58] sm:$0xff]  ;;  %v27_v35 = vld [vmem:[%s893_s0 + $0x68] sm:$0xff] }
   0x6   :  { %v153_v20 = vadd.f32 %v379_v2, %v85_v10  ;;  %v155_v27 = vadd.f32 %v379_v2, %v87_v17  ;;  %v156_v28 = vadd.f32 %v379_v2, %v88_v18  ;;  %v26_v31 = vld [vmem:[%s893_s0 + $0x60] sm:$0xff]  ;;  %v157_v34 = vadd.f32 %v379_v2, %v89_v22  ;;  %v28_v36 = vld [vmem:[%s893_s0 + $0x70] sm:$0xff]  ;;  %v29_v41 = vld [vmem:[%s893_s0 + $0x78] sm:$0xff] }
   0x7   :  { %v154_v21 = vadd.f32 %v379_v2, %v86_v11  ;;  %v214_v25 = vmax.f32 %v150_v15, 0.0  ;;  %v215_v26 = vmax.f32 %v151_v16, 0.0  ;;  %v216_v32 = vmax.f32 %v152_v19, 0.0  ;;  %v30_v54 = vld [vmem:[%s893_s0 + $0x80] sm:$0xff]  ;;  %v31_v55 = vld [vmem:[%s893_s0 + $0x88] sm:$0xff]  ;;  %v32_v58 = vld [vmem:[%s893_s0 + $0x90] sm:$0xff] }
   0x8   :  { %v217_v33 = vmax.f32 %v153_v20, 0.0  ;;  %v219_v38 = vmax.f32 %v155_v27, 0.0  ;;  %v90_v39 = vmul.f32 %v374_v1, %v22_v23  ;;  %v91_v40 = vmul.f32 %v374_v1, %v23_v24  ;;  %v33_v59 = vld [vmem:[%s893_s0 + $0x98] sm:$0xff]  ;;  %v34_v62 = vld [vmem:[%s893_s0 + $0xa0] sm:$0xff]  ;;  %v35_v5 = vld [vmem:[%s893_s0 + $0xa8] sm:$0xff] }
   0x9   :  { %278 = vst [vmem:[%s896_s3] sm:$0xff] %v214_v25  ;;  %v218_v37 = vmax.f32 %v154_v21, 0.0  ;;  %v220_v42 = vmax.f32 %v156_v28, 0.0  ;;  %v92_v43 = vmul.f32 %v374_v1, %v24_v29  ;;  %v93_v44 = vmul.f32 %v374_v1, %v25_v30  ;;  %v36_v10 = vld [vmem:[%s893_s0 + $0xb0] sm:$0xff]  ;;  %v37_v14 = vld [vmem:[%s893_s0 + $0xb8] sm:$0xff]  ;;  %v38_v18 = vld [vmem:[%s893_s0 + $0xc0] sm:$0xff] }
   0xa   :  { %279 = vst [vmem:[%s896_s3 + $0x8] sm:$0xff] %v215_v26  ;;  %v94_v45 = vmul.f32 %v374_v1, %v26_v31  ;;  %v158_v46 = vadd.f32 %v379_v2, %v90_v39  ;;  %v159_v47 = vadd.f32 %v379_v2, %v91_v40  ;;  %v95_v48 = vmul.f32 %v374_v1, %v27_v35  ;;  %v39_v22 = vld [vmem:[%s893_s0 + $0xc8] sm:$0xff]  ;;  %v40_v26 = vld [vmem:[%s893_s0 + $0xd0] sm:$0xff]  ;;  %v41_v30 = vld [vmem:[%s893_s0 + $0xd8] sm:$0xff] }
   0xb   :  { %280 = vst [vmem:[%s896_s3 + $0x10] sm:$0xff] %v216_v32  ;;  %v96_v49 = vmul.f32 %v374_v1, %v28_v36  ;;  %v221_v50 = vmax.f32 %v157_v34, 0.0  ;;  %v160_v51 = vadd.f32 %v379_v2, %v92_v43  ;;  %v161_v52 = vadd.f32 %v379_v2, %v93_v44  ;;  %v42_v34 = vld [vmem:[%s893_s0 + $0xe0] sm:$0xff] }
   0xc   :  { %281 = vst [vmem:[%s896_s3 + $0x18] sm:$0xff] %v217_v33  ;;  %v97_v53 = vmul.f32 %v374_v1, %v29_v41  ;;  %v222_v56 = vmax.f32 %v158_v46, 0.0  ;;  %v162_v57 = vadd.f32 %v379_v2, %v94_v45  ;;  %v223_v60 = vmax.f32 %v159_v47, 0.0  ;;  %v45_v46 = vld [vmem:[%s893_s0 + $0xf8] sm:$0xff] }
   0xd   :  { %282 = vst [vmem:[%s896_s3 + $0x20] sm:$0xff] %v218_v37  ;;  %v163_v61 = vadd.f32 %v379_v2, %v95_v48  ;;  %v224_v63 = vmax.f32 %v160_v51, 0.0  ;;  %v164_v0 = vadd.f32 %v379_v2, %v96_v49  ;;  %v98_v3 = vmul.f32 %v374_v1, %v30_v54  ;;  %v47_v54 = vld [vmem:[%s893_s0 + $0x108] sm:$0xff] }
   0xe   :  { %283 = vst [vmem:[%s896_s3 + $0x28] sm:$0xff] %v219_v38  ;;  %v99_v4 = vmul.f32 %v374_v1, %v31_v55  ;;  %v225_v6 = vmax.f32 %v161_v52, 0.0  ;;  %v165_v7 = vadd.f32 %v379_v2, %v97_v53  ;;  %v100_v8 = vmul.f32 %v374_v1, %v32_v58  ;;  %v43_v38 = vld [vmem:[%s893_s0 + $0xe8] sm:$0xff]  ;;  %v48_v58 = vld [vmem:[%s893_s0 + $0x110] sm:$0xff] }
   0xf   :  { %284 = vst [vmem:[%s896_s3 + $0x30] sm:$0xff] %v220_v42  ;;  %v101_v9 = vmul.f32 %v374_v1, %v33_v59  ;;  %v226_v11 = vmax.f32 %v162_v57, 0.0  ;;  %v166_v12 = vadd.f32 %v379_v2, %v98_v3  ;;  %v102_v13 = vmul.f32 %v374_v1, %v34_v62  ;;  %v44_v42 = vld [vmem:[%s893_s0 + $0xf0] sm:$0xff]  ;;  %v49_v62 = vld [vmem:[%s893_s0 + $0x118] sm:$0xff] }
  0x10   :  { %285 = vst [vmem:[%s896_s3 + $0x38] sm:$0xff] %v221_v50  ;;  %v227_v15 = vmax.f32 %v163_v61, 0.0  ;;  %v167_v16 = vadd.f32 %v379_v2, %v99_v4  ;;  %v103_v17 = vmul.f32 %v374_v1, %v35_v5  ;;  %v228_v19 = vmax.f32 %v164_v0, 0.0  ;;  %v46_v50 = vld [vmem:[%s893_s0 + $0x100] sm:$0xff] }
  0x11   :  { %286 = vst [vmem:[%s896_s3 + $0x40] sm:$0xff] %v222_v56  ;;  %v168_v20 = vadd.f32 %v379_v2, %v100_v8  ;;  %v104_v21 = vmul.f32 %v374_v1, %v36_v10  ;;  %v229_v23 = vmax.f32 %v165_v7, 0.0  ;;  %v169_v24 = vadd.f32 %v379_v2, %v101_v9  ;;  %v50_v4 = vld [vmem:[%s893_s0 + $0x120] sm:$0xff]  ;;  %v51_v8 = vld [vmem:[%s893_s0 + $0x128] sm:$0xff] }
  0x12   :  { %287 = vst [vmem:[%s896_s3 + $0x48] sm:$0xff] %v223_v60  ;;  %v105_v25 = vmul.f32 %v374_v1, %v37_v14  ;;  %v230_v27 = vmax.f32 %v166_v12, 0.0  ;;  %v170_v28 = vadd.f32 %v379_v2, %v102_v13  ;;  %v106_v29 = vmul.f32 %v374_v1, %v38_v18  ;;  %v52_v12 = vld [vmem:[%s893_s0 + $0x130] sm:$0xff] }
  0x13   :  { %288 = vst [vmem:[%s896_s3 + $0x50] sm:$0xff] %v224_v63  ;;  %v231_v31 = vmax.f32 %v167_v16, 0.0  ;;  %v171_v32 = vadd.f32 %v379_v2, %v103_v17  ;;  %v107_v33 = vmul.f32 %v374_v1, %v39_v22  ;;  %v232_v35 = vmax.f32 %v168_v20, 0.0  ;;  %v53_v16 = vld [vmem:[%s893_s0 + $0x138] sm:$0xff]  ;;  %v54_v20 = vld [vmem:[%s893_s0 + $0x140] sm:$0xff] }
  0x14   :  { %289 = vst [vmem:[%s896_s3 + $0x58] sm:$0xff] %v225_v6  ;;  %v172_v36 = vadd.f32 %v379_v2, %v104_v21  ;;  %v108_v37 = vmul.f32 %v374_v1, %v40_v26  ;;  %v233_v39 = vmax.f32 %v169_v24, 0.0  ;;  %v173_v40 = vadd.f32 %v379_v2, %v105_v25  ;;  %v55_v24 = vld [vmem:[%s893_s0 + $0x148] sm:$0xff] }
  0x15   :  { %290 = vst [vmem:[%s896_s3 + $0x60] sm:$0xff] %v226_v11  ;;  %v109_v41 = vmul.f32 %v374_v1, %v41_v30  ;;  %v234_v43 = vmax.f32 %v170_v28, 0.0  ;;  %v174_v44 = vadd.f32 %v379_v2, %v106_v29  ;;  %v110_v45 = vmul.f32 %v374_v1, %v42_v34  ;;  %v56_v28 = vld [vmem:[%s893_s0 + $0x150] sm:$0xff] }
  0x16   :  { %291 = vst [vmem:[%s896_s3 + $0x68] sm:$0xff] %v227_v15  ;;  %v235_v47 = vmax.f32 %v171_v32, 0.0  ;;  %v175_v48 = vadd.f32 %v379_v2, %v107_v33  ;;  %v111_v49 = vmul.f32 %v374_v1, %v43_v38  ;;  %v236_v51 = vmax.f32 %v172_v36, 0.0  ;;  %v57_v32 = vld [vmem:[%s893_s0 + $0x158] sm:$0xff]  ;;  %v58_v36 = vld [vmem:[%s893_s0 + $0x160] sm:$0xff] }
  0x17   :  { %292 = vst [vmem:[%s896_s3 + $0x70] sm:$0xff] %v228_v19  ;;  %v176_v52 = vadd.f32 %v379_v2, %v108_v37  ;;  %v112_v53 = vmul.f32 %v374_v1, %v44_v42  ;;  %v237_v55 = vmax.f32 %v173_v40, 0.0  ;;  %v177_v56 = vadd.f32 %v379_v2, %v109_v41  ;;  %v59_v40 = vld [vmem:[%s893_s0 + $0x168] sm:$0xff] }
  0x18   :  { %293 = vst [vmem:[%s896_s3 + $0x78] sm:$0xff] %v229_v23  ;;  %v113_v57 = vmul.f32 %v374_v1, %v45_v46  ;;  %v238_v59 = vmax.f32 %v174_v44, 0.0  ;;  %v178_v60 = vadd.f32 %v379_v2, %v110_v45  ;;  %v114_v61 = vmul.f32 %v374_v1, %v46_v50  ;;  %v60_v44 = vld [vmem:[%s893_s0 + $0x170] sm:$0xff] }
  0x19   :  { %294 = vst [vmem:[%s896_s3 + $0x80] sm:$0xff] %v230_v27  ;;  %v239_v63 = vmax.f32 %v175_v48, 0.0  ;;  %v179_v0 = vadd.f32 %v379_v2, %v111_v49  ;;  %v115_v3 = vmul.f32 %v374_v1, %v47_v54  ;;  %v240_v5 = vmax.f32 %v176_v52, 0.0  ;;  %v61_v48 = vld [vmem:[%s893_s0 + $0x178] sm:$0xff]  ;;  %v62_v52 = vld [vmem:[%s893_s0 + $0x180] sm:$0xff] }
  0x1a   :  { %295 = vst [vmem:[%s896_s3 + $0x88] sm:$0xff] %v231_v31  ;;  %v180_v6 = vadd.f32 %v379_v2, %v112_v53  ;;  %v116_v7 = vmul.f32 %v374_v1, %v48_v58  ;;  %v241_v9 = vmax.f32 %v177_v56, 0.0  ;;  %v181_v10 = vadd.f32 %v379_v2, %v113_v57  ;;  %v63_v56 = vld [vmem:[%s893_s0 + $0x188] sm:$0xff] }
  0x1b   :  { %296 = vst [vmem:[%s896_s3 + $0x90] sm:$0xff] %v232_v35  ;;  %v117_v11 = vmul.f32 %v374_v1, %v49_v62  ;;  %v242_v13 = vmax.f32 %v178_v60, 0.0  ;;  %v182_v14 = vadd.f32 %v379_v2, %v114_v61  ;;  %v118_v15 = vmul.f32 %v374_v1, %v50_v4  ;;  %v64_v60 = vld [vmem:[%s893_s0 + $0x190] sm:$0xff] }
  0x1c   :  { %297 = vst [vmem:[%s896_s3 + $0x98] sm:$0xff] %v233_v39  ;;  %v243_v17 = vmax.f32 %v179_v0, 0.0  ;;  %v183_v18 = vadd.f32 %v379_v2, %v115_v3  ;;  %v119_v19 = vmul.f32 %v374_v1, %v51_v8  ;;  %v244_v21 = vmax.f32 %v180_v6, 0.0  ;;  %v65_v0 = vld [vmem:[%s893_s0 + $0x198] sm:$0xff] }
  0x1d   :  { %298 = vst [vmem:[%s896_s3 + $0xa0] sm:$0xff] %v234_v43  ;;  %v184_v22 = vadd.f32 %v379_v2, %v116_v7  ;;  %v120_v23 = vmul.f32 %v374_v1, %v52_v12  ;;  %v245_v25 = vmax.f32 %v181_v10, 0.0  ;;  %v185_v26 = vadd.f32 %v379_v2, %v117_v11  ;;  %v77_v3 = vld [vmem:[%s893_s0 + $0x1f8] sm:$0xff]  ;;  %v66_v7 = vld [vmem:[%s893_s0 + $0x1a0] sm:$0xff]  ;;  %v67_v11 = vld [vmem:[%s893_s0 + $0x1a8] sm:$0xff] }
  0x1e   :  { %299 = vst [vmem:[%s896_s3 + $0xa8] sm:$0xff] %v235_v47  ;;  %v121_v27 = vmul.f32 %v374_v1, %v53_v16  ;;  %v246_v29 = vmax.f32 %v182_v14, 0.0  ;;  %v186_v30 = vadd.f32 %v379_v2, %v118_v15  ;;  %v122_v31 = vmul.f32 %v374_v1, %v54_v20  ;;  %v68_v15 = vld [vmem:[%s893_s0 + $0x1b0] sm:$0xff]  ;;  %v69_v20 = vld [vmem:[%s893_s0 + $0x1b8] sm:$0xff] }
  0x1f   :  { %300 = vst [vmem:[%s896_s3 + $0xb0] sm:$0xff] %v236_v51  ;;  %v247_v33 = vmax.f32 %v183_v18, 0.0  ;;  %v187_v34 = vadd.f32 %v379_v2, %v119_v19  ;;  %v123_v35 = vmul.f32 %v374_v1, %v55_v24  ;;  %v248_v37 = vmax.f32 %v184_v22, 0.0  ;;  %v70_v24 = vld [vmem:[%s893_s0 + $0x1c0] sm:$0xff] }
  0x20   :  { %301 = vst [vmem:[%s896_s3 + $0xb8] sm:$0xff] %v237_v55  ;;  %v188_v38 = vadd.f32 %v379_v2, %v120_v23  ;;  %v124_v39 = vmul.f32 %v374_v1, %v56_v28  ;;  %v249_v41 = vmax.f32 %v185_v26, 0.0  ;;  %v189_v42 = vadd.f32 %v379_v2, %v121_v27 }
  0x21   :  { %302 = vst [vmem:[%s896_s3 + $0xc0] sm:$0xff] %v238_v59  ;;  %v125_v43 = vmul.f32 %v374_v1, %v57_v32  ;;  %v250_v45 = vmax.f32 %v186_v30, 0.0  ;;  %v190_v46 = vadd.f32 %v379_v2, %v122_v31  ;;  %v126_v47 = vmul.f32 %v374_v1, %v58_v36 }
  0x22   :  { %303 = vst [vmem:[%s896_s3 + $0xc8] sm:$0xff] %v239_v63  ;;  %v251_v49 = vmax.f32 %v187_v34, 0.0  ;;  %v191_v50 = vadd.f32 %v379_v2, %v123_v35  ;;  %v127_v51 = vmul.f32 %v374_v1, %v59_v40  ;;  %v252_v53 = vmax.f32 %v188_v38, 0.0 }
  0x23   :  { %304 = vst [vmem:[%s896_s3 + $0xd0] sm:$0xff] %v240_v5  ;;  %v192_v54 = vadd.f32 %v379_v2, %v124_v39  ;;  %v128_v55 = vmul.f32 %v374_v1, %v60_v44  ;;  %v253_v57 = vmax.f32 %v189_v42, 0.0  ;;  %v193_v58 = vadd.f32 %v379_v2, %v125_v43 }
  0x24   :  { %305 = vst [vmem:[%s896_s3 + $0xd8] sm:$0xff] %v241_v9  ;;  %v129_v59 = vmul.f32 %v374_v1, %v61_v48  ;;  %v254_v61 = vmax.f32 %v190_v46, 0.0  ;;  %v194_v62 = vadd.f32 %v379_v2, %v126_v47  ;;  %v130_v63 = vmul.f32 %v374_v1, %v62_v52 }
  0x25   :  { %306 = vst [vmem:[%s896_s3 + $0xe0] sm:$0xff] %v242_v13  ;;  %v255_v4 = vmax.f32 %v191_v50, 0.0  ;;  %v195_v5 = vadd.f32 %v379_v2, %v127_v51  ;;  %v131_v6 = vmul.f32 %v374_v1, %v63_v56  ;;  %v256_v8 = vmax.f32 %v192_v54, 0.0 }
  0x26   :  { %307 = vst [vmem:[%s896_s3 + $0xe8] sm:$0xff] %v243_v17  ;;  %v196_v9 = vadd.f32 %v379_v2, %v128_v55  ;;  %v132_v10 = vmul.f32 %v374_v1, %v64_v60  ;;  %v257_v12 = vmax.f32 %v193_v58, 0.0  ;;  %v197_v13 = vadd.f32 %v379_v2, %v129_v59 }
  0x27   :  { %308 = vst [vmem:[%s896_s3 + $0xf0] sm:$0xff] %v244_v21  ;;  %v133_v14 = vmul.f32 %v374_v1, %v65_v0  ;;  %v145_v16 = vmul.f32 %v374_v1, %v77_v3  ;;  %v258_v17 = vmax.f32 %v194_v62, 0.0  ;;  %v198_v18 = vadd.f32 %v379_v2, %v130_v63 }
  0x28   :  { %309 = vst [vmem:[%s896_s3 + $0xf8] sm:$0xff] %v245_v25  ;;  %v134_v19 = vmul.f32 %v374_v1, %v66_v7  ;;  %v259_v21 = vmax.f32 %v195_v5, 0.0  ;;  %v199_v22 = vadd.f32 %v379_v2, %v131_v6  ;;  %v135_v23 = vmul.f32 %v374_v1, %v67_v11 }
  0x29   :  { %310 = vst [vmem:[%s896_s3 + $0x100] sm:$0xff] %v246_v29  ;;  %v784_v25 = vadd.f32 %v379_v2, %v145_v16  ;;  %v260_v26 = vmax.f32 %v196_v9, 0.0  ;;  %v200_v27 = vadd.f32 %v379_v2, %v132_v10  ;;  %v136_v28 = vmul.f32 %v374_v1, %v68_v15  ;;  %v71_v29 = vld [vmem:[%s893_s0 + $0x1c8] sm:$0xff] }
  0x2a   :  { %311 = vst [vmem:[%s896_s3 + $0x108] sm:$0xff] %v247_v33  ;;  %v261_v30 = vmax.f32 %v197_v13, 0.0  ;;  %v201_v31 = vadd.f32 %v379_v2, %v133_v14  ;;  %v137_v32 = vmul.f32 %v374_v1, %v69_v20  ;;  %v72_v33 = vld [vmem:[%s893_s0 + $0x1d0] sm:$0xff]  ;;  %v262_v34 = vmax.f32 %v198_v18, 0.0 }
  0x2b   :  { %312 = vst [vmem:[%s896_s3 + $0x110] sm:$0xff] %v248_v37  ;;  %v202_v35 = vadd.f32 %v379_v2, %v134_v19  ;;  %v138_v36 = vmul.f32 %v374_v1, %v70_v24  ;;  %v73_v37 = vld [vmem:[%s893_s0 + $0x1d8] sm:$0xff]  ;;  %v263_v38 = vmax.f32 %v199_v22, 0.0  ;;  %v203_v39 = vadd.f32 %v379_v2, %v135_v23 }
  0x2c   :  { %313 = vst [vmem:[%s896_s3 + $0x118] sm:$0xff] %v249_v41  ;;  %v139_v40 = vmul.f32 %v374_v1, %v71_v29  ;;  %v74_v41 = vld [vmem:[%s893_s0 + $0x1e0] sm:$0xff]  ;;  %v264_v42 = vmax.f32 %v200_v27, 0.0  ;;  %v204_v43 = vadd.f32 %v379_v2, %v136_v28  ;;  %v140_v44 = vmul.f32 %v374_v1, %v72_v33 }
  0x2d   :  { %314 = vst [vmem:[%s896_s3 + $0x120] sm:$0xff] %v250_v45  ;;  %v75_v45 = vld [vmem:[%s893_s0 + $0x1e8] sm:$0xff]  ;;  %v265_v46 = vmax.f32 %v201_v31, 0.0  ;;  %v205_v47 = vadd.f32 %v379_v2, %v137_v32  ;;  %v141_v48 = vmul.f32 %v374_v1, %v73_v37  ;;  %v266_v50 = vmax.f32 %v202_v35, 0.0 }
  0x2e   :  { %315 = vst [vmem:[%s896_s3 + $0x128] sm:$0xff] %v251_v49  ;;  %v76_v49 = vld [vmem:[%s893_s0 + $0x1f0] sm:$0xff]  ;;  %v206_v51 = vadd.f32 %v379_v2, %v138_v36  ;;  %v142_v52 = vmul.f32 %v374_v1, %v74_v41  ;;  %v207_v54 = vadd.f32 %v379_v2, %v139_v40  ;;  %v143_v55 = vmul.f32 %v374_v1, %v75_v45 }
  0x2f   :  { %316 = vst [vmem:[%s896_s3 + $0x130] sm:$0xff] %v252_v53  ;;  %v267_v53 = vmax.f32 %v203_v39, 0.0  ;;  %v268_v56 = vmax.f32 %v204_v43, 0.0  ;;  %v144_v58 = vmul.f32 %v374_v1, %v76_v49  ;;  %v269_v59 = vmax.f32 %v205_v47, 0.0 }
  0x30   :  { %317 = vst [vmem:[%s896_s3 + $0x138] sm:$0xff] %v253_v57  ;;  %v208_v57 = vadd.f32 %v379_v2, %v140_v44  ;;  %v209_v60 = vadd.f32 %v379_v2, %v141_v48  ;;  %v210_v62 = vadd.f32 %v379_v2, %v142_v52  ;;  %v271_v63 = vmax.f32 %v207_v54, 0.0 }
  0x31   :  { %318 = vst [vmem:[%s896_s3 + $0x140] sm:$0xff] %v254_v61  ;;  %v270_v61 = vmax.f32 %v206_v51, 0.0  ;;  %v211_v1 = vadd.f32 %v379_v2, %v143_v55  ;;  %v212_v3 = vadd.f32 %v379_v2, %v144_v58  ;;  %v277_v7 = vmax.f32 %v784_v25, 0.0 }
  0x32   :  { %319 = vst [vmem:[%s896_s3 + $0x148] sm:$0xff] %v255_v4  ;;  %v272_v0 = vmax.f32 %v208_v57, 0.0  ;;  %v273_v4 = vmax.f32 %v209_v60, 0.0  ;;  %v274_v5 = vmax.f32 %v210_v62, 0.0 }
  0x33   :  { %320 = vst [vmem:[%s896_s3 + $0x150] sm:$0xff] %v256_v8  ;;  %v275_v6 = vmax.f32 %v211_v1, 0.0  ;;  %v276_v2 = vmax.f32 %v212_v3, 0.0 }
  0x34   :  { %321 = vst [vmem:[%s896_s3 + $0x158] sm:$0xff] %v257_v12 }
  0x35   :  { %322 = vst [vmem:[%s896_s3 + $0x160] sm:$0xff] %v258_v17 }
  0x36   :  { %323 = vst [vmem:[%s896_s3 + $0x168] sm:$0xff] %v259_v21 }
  0x37   :  { %324 = vst [vmem:[%s896_s3 + $0x170] sm:$0xff] %v260_v26 }
  0x38   :  { %325 = vst [vmem:[%s896_s3 + $0x178] sm:$0xff] %v261_v30 }
  0x39   :  { %326 = vst [vmem:[%s896_s3 + $0x180] sm:$0xff] %v262_v34 }
  0x3a   :  { %327 = vst [vmem:[%s896_s3 + $0x188] sm:$0xff] %v263_v38 }
  0x3b   :  { %328 = vst [vmem:[%s896_s3 + $0x190] sm:$0xff] %v264_v42 }
  0x3c   :  { %329 = vst [vmem:[%s896_s3 + $0x198] sm:$0xff] %v265_v46 }
  0x3d   :  { %330 = vst [vmem:[%s896_s3 + $0x1a0] sm:$0xff] %v266_v50 }
  0x3e   :  { %331 = vst [vmem:[%s896_s3 + $0x1a8] sm:$0xff] %v267_v53 }
  0x3f   :  { %332 = vst [vmem:[%s896_s3 + $0x1b0] sm:$0xff] %v268_v56 }
  0x40   :  { %333 = vst [vmem:[%s896_s3 + $0x1b8] sm:$0xff] %v269_v59 }
  0x41   :  { %334 = vst [vmem:[%s896_s3 + $0x1c0] sm:$0xff] %v270_v61 }
  0x42   :  { %335 = vst [vmem:[%s896_s3 + $0x1c8] sm:$0xff] %v271_v63 }
  0x43   :  { %336 = vst [vmem:[%s896_s3 + $0x1d0] sm:$0xff] %v272_v0 }
  0x44   :  { %337 = vst [vmem:[%s896_s3 + $0x1d8] sm:$0xff] %v273_v4 }
  0x45   :  { %338 = vst [vmem:[%s896_s3 + $0x1e0] sm:$0xff] %v274_v5 }
  0x46   :  { %339 = vst [vmem:[%s896_s3 + $0x1e8] sm:$0xff] %v275_v6 }
  0x47   :  { %340 = vst [vmem:[%s896_s3 + $0x1f0] sm:$0xff] %v276_v2 }
  0x48   :  { %341 = vst [vmem:[%s896_s3 + $0x1f8] sm:$0xff] %v277_v7 }

// kernel: conv_bn_relu_nhwc.2
= control target key start
LH: loop header
LB: loop body
LE: loop exit
PB: predicated region body
PF: predicated region fallthrough
CT: control target
= control target key end

     0   :  { %s2154_s15 = smov 0   ;;  %s2156_s16 = smov 0   ;;  %s3143_s0 = inlined_call_operand.vmem [shape: f32[2,432,4], index: 0, kind: input, shape index: {}, may-alias: {0,1}]   ;;  %s3144_s1 = inlined_call_operand.vmem [shape: f32[2,432,4], index: 1, kind: input, shape index: {}, may-alias: {0,1}]   ;;  %s3145_s2 = inlined_call_operand.vmem [shape: f32[128,128], index: 2, kind: input, shape index: {}]   ;;  %s3146_s3 = inlined_call_operand.vmem [shape: f32[2,16,16,128], index: 3, kind: output, shape index: {0}]   ;;  %s3147_s4 = inlined_call_operand.vmem [shape: f32[2,2,2,128], index: 4, kind: output, shape index: {1}]  }
   0x1   :  { %s2158_s17 = smov 0   ;;  %s2160_s18 = smov 0  }
   0x2   :  { %s2162_s19 = smov 0  }
   0x3 LB: > { %s24_s20 = sadd.s32 1, %s2110_s17  ;;  %s27_s21 = sadd.s32 1, %s2114_s18  ;;  %s2118_s19 = sphi %s2162_s19, %s15_s19   ;;  %s2114_s18 = sphi %s2160_s18, %s3151_s18   ;;  %s2110_s17 = sphi %s2158_s17, %s3150_s17   ;;  %s2106_s16 = sphi %s2156_s16, %s3149_s16   ;;  %s2102_s15 = sphi %s2154_s15, %s3148_s15  }
   0x4   : > { %p25_p0 = scmp.ge.s32.totalorder %s24_s20, 2  ;;  %p1963_p1 = scmp.ge.s32.totalorder %s2118_s19, 1 }
   0x5   : > { %p221_p2 = scmp.lt.s32.totalorder %s2118_s19, 5 }
   0x6   : > { %s3153_s20 = smov (%p25_p0, %s24_s20), 0  ;;  %s3155_s21 = smov (!%p25_p0, %s27_s21), %s2114_s18 }
   0x7   : > { %p222_p3 = pnand %p1963_p1, %p221_p2  ;;  %p29_p4 = scmp.ge.s32.totalorder %s3155_s21, 2 }
   0x8   : > { %s279_s22 = smul.u32 (!%p222_p3), 24, %s2102_s15  ;;  %p284_p5 = scmp.lt.s32.totalorder (!%p222_p3), %s2106_s16, 1 }
   0x9   : > { %s3157_s21 = smov (%p29_p4, %s3155_s21), 0  ;;  %225 = sbr.rel (%p222_p3) target bundleno = 792 (0x318), region = 32 }
   0xa   : > { %p286_p6 = scmp.lt.s32.totalorder (!%p222_p3), %s279_s22, 53  ;;  %s2120_s29 = smov (!%p222_p3), 4  }
   0xb   : > { %s297_s30 = sadd.s32 (!%p222_p3), 1, %s2102_s15  ;;  %s2121_s11 = smov (!%p222_p3), 8  }
   0xc   : > { %s1966_s5 = smul.u32 (!%p222_p3), 24, %s297_s30  ;;  %s2123_s12 = smov (!%p222_p3), 12  }
   0xd   : > { %s2124_s13 = smov (!%p222_p3), 16   ;;  %s2125_s14 = smov (!%p222_p3), 20  }
   0xe   : > { %s3159_s16 = smov (!%p284_p5, %s2106_s16), 1  ;;  %s3161_s22 = smov (!%p286_p6, %s279_s22), 53  ;;  %vm330_vm0 = vcmask 1047840   ;;  %v2122_v31 = vmov 0.0   ;;  %vm379_vm1 = vcmask 31744   ;;  %vm524_vm2 = vcmask 64544  }
   0xf   : > { %s2030_s23 = smul.u32 54, %s3159_s16  ;;  %p302_p7 = scmp.lt.s32.totalorder %s1966_s5, 53  ;;  %335 = vst.msk [vmem:[#allocation2 + $0x20] sm:$0xff] %vm330_vm0, %v2122_v31  ;;  %vm548_vm3 = vcmask 63520   ;;  %vm677_vm4 = vcmask 97344   ;;  %vm555_vm5 = vcmask 57376  }
  0x10   : > { %331 = vst.msk [vmem:[#allocation2] sm:$0xff] %vm330_vm0, %v2122_v31  ;;  %vm815_vm6 = vcmask 130144   ;;  %vm708_vm7 = vcmask 91200   ;;  %vm701_vm8 = vcmask 95296   ;;  %vm960_vm9 = vcmask 162944   ;;  %p324_p9 = scmp.lt.s32.totalorder %s2102_s15, 1 }
  0x11   : > { %s289_s24 = sadd.s32 %s2030_s23, %s3161_s22  ;;  %s3163_s5 = smov (!%p302_p7, %s1966_s5), 53  ;;  %332 = vst.msk [vmem:[#allocation2 + $0x8] sm:$0xff] %vm330_vm0, %v2122_v31  ;;  %vm1006_vm10 = vcmask 155776   ;;  %vm1113_vm11 = vcmask 195744   ;;  %vm981_vm12 = vcmask 161920   ;;  %vm1251_vm13 = vcmask 228544  }
  0x12   : > { %s1964_s25 = sshll.u32 %s289_s24, 3  ;;  %s305_s6 = sadd.s32 %s2030_s23, %s3163_s5  ;;  %333 = vst.msk [vmem:[#allocation2 + $0x10] sm:$0xff] %vm330_vm0, %v2122_v31  ;;  %vm1396_vm14 = vcmask 261344   ;;  %vm1542_vm15 = vcmask 294144  }
  0x13   : > { %s2195_s28 = scalar_lea.vmem %s3143_s0, %s1964_s25  ;;  %s1967_s7 = sshll.u32 %s305_s6, 3  ;;  %334 = vst.msk [vmem:[#allocation2 + $0x18] sm:$0xff] %vm330_vm0, %v2122_v31 }
  0x14   : > { %v406_v0 = vld [vmem:[%s2195_s28 + $0x11] sm:$0xff]  ;;  %v404_v1 = vld [vmem:[%s2195_s28 + $0x1] sm:$0xff]  ;;  %v2207_v3 = vld [vmem:[%s2195_s28 + $0x19] sm:$0xff]  ;;  %s2310_s10 = scalar_lea.vmem %s3144_s1, %s1967_s7  ;;  %336 = vst.msk [vmem:[#allocation2 + $0x28] sm:$0xff] %vm330_vm0, %v2122_v31  ;;  %s2126_s22 = smov 28  }
  0x15   : > { %456 = vrot.lane.b32.xlu1 %v406_v0, %s2120_s29  ;;  %452 = vrot.lane.b32.xlu0 %v404_v1, %s2120_s29  ;;  %v2202_v2 = vld [vmem:[%s2195_s28 + $0x21] sm:$0xff]  ;;  %v405_v4 = vld [vmem:[%s2195_s28 + $0x9] sm:$0xff]  ;;  %337 = vst.msk [vmem:[#allocation2 + $0x30] sm:$0xff] %vm330_vm0, %v2122_v31  ;;  %s2127_s23 = smov 24   ;;  %s2128_s24 = smov 32  }
  0x16   : > { %460 = vrot.lane.b32.xlu2 %v2202_v2, %s2120_s29  ;;  %v2211_v5 = vld [vmem:[%s2195_s28 + $0x29] sm:$0xff]  ;;  %v2219_v6 = vld [vmem:[%s2195_s28 + $0x39] sm:$0xff]  ;;  %v2222_v7 = vld [vmem:[%s2195_s28 + $0x31] sm:$0xff]  ;;  %338 = vst.msk [vmem:[#allocation2 + $0x38] sm:$0xff] %vm330_vm0, %v2122_v31  ;;  %s1972_s8 = sshll.u32 %s3159_s16, 1 }
  0x17   : > { %v2225_v8 = vld [vmem:[%s2195_s28 + $0x41] sm:$0xff]  ;;  %v2234_v9 = vld [vmem:[%s2195_s28 + $0x51] sm:$0xff]  ;;  %v2237_v10 = vld [vmem:[%s2195_s28 + $0x49] sm:$0xff]  ;;  %339 = vst.msk [vmem:[#allocation2 + $0x40] sm:$0xff] %vm330_vm0, %v2122_v31 }
  0x18   : > { %v2240_v11 = vld [vmem:[%s2195_s28 + $0x59] sm:$0xff]  ;;  %v2249_v12 = vld [vmem:[%s2195_s28 + $0x69] sm:$0xff]  ;;  %v2252_v13 = vld [vmem:[%s2195_s28 + $0x61] sm:$0xff]  ;;  %340 = vst.msk [vmem:[#allocation2 + $0x48] sm:$0xff] %vm330_vm0, %v2122_v31 }
  0x19   : > { %v2255_v14 = vld [vmem:[%s2195_s28 + $0x71] sm:$0xff]  ;;  %v2264_v15 = vld [vmem:[%s2195_s28 + $0x81] sm:$0xff]  ;;  %v2267_v16 = vld [vmem:[%s2195_s28 + $0x79] sm:$0xff]  ;;  %341 = vst.msk [vmem:[#allocation2 + $0x50] sm:$0xff] %vm330_vm0, %v2122_v31 }
  0x1a   : > { %v2271_v17 = vld [vmem:[%s2195_s28 + $0x89] sm:$0xff]  ;;  %v2280_v18 = vld [vmem:[%s2195_s28 + $0x99] sm:$0xff]  ;;  %v2283_v19 = vld [vmem:[%s2195_s28 + $0x91] sm:$0xff]  ;;  %342 = vst.msk [vmem:[#allocation2 + $0x58] sm:$0xff] %vm330_vm0, %v2122_v31 }
  0x1b   : > { %v2286_v20 = vld [vmem:[%s2195_s28 + $0xa1] sm:$0xff]  ;;  %v2297_v21 = vld [vmem:[%s2195_s28 + $0xb1] sm:$0xff]  ;;  %v2300_v22 = vld [vmem:[%s2195_s28 + $0xa9] sm:$0xff]  ;;  %343 = vst.msk [vmem:[#allocation2 + $0x60] sm:$0xff] %vm330_vm0, %v2122_v31 }
  0x1c   : > { %v427_v23 = vld [vmem:[%s2195_s28 + $0xb9] sm:$0x7f]  ;;  %v557_v24 = vld [vmem:[%s2195_s28 + $0x2] sm:$0xff]  ;;  %v550_v25 = vld [vmem:[%s2310_s10] sm:$0x1]  ;;  %344 = vst.msk [vmem:[#allocation2 + $0x68] sm:$0xff] %vm330_vm0, %v2122_v31 }
  0x1d   : > { %458 = vrot.lane.b32.xlu1 %v2207_v3, %s2120_s29  ;;  %454 = vrot.lane.b32.xlu0 %v405_v4, %s2120_s29  ;;  %v558_v26 = vld [vmem:[%s2195_s28 + $0xa] sm:$0xff]  ;;  %v2320_v27 = vld [vmem:[%s2195_s28 + $0x1a] sm:$0xff]  ;;  %345 = vst.msk [vmem:[#allocation2 + $0x70] sm:$0xff] %vm330_vm0, %v2122_v31 }
  0x1e   : > { %462 = vrot.lane.b32.xlu2 %v2211_v5, %s2120_s29  ;;  %v559_v28 = vld [vmem:[%s2195_s28 + $0x12] sm:$0xff]  ;;  %v2324_v29 = vld [vmem:[%s2195_s28 + $0x22] sm:$0xff]  ;;  %v2343_v33 = vld [vmem:[%s2195_s28 + $0x2a] sm:$0xff]  ;;  %346 = vst.msk [vmem:[#allocation2 + $0x78] sm:$0xff] %vm330_vm0, %v2122_v31 }
  0x1f   : > { %v2330_v30 = vld [vmem:[%s2195_s28 + $0x20] sm:$0xff]  ;;  %v2340_v32 = vld [vmem:[%s2195_s28 + $0x32] sm:$0xff]  ;;  %v2363_v35 = vld [vmem:[%s2195_s28 + $0x4a] sm:$0xff]  ;;  %347 = vst.msk [vmem:[#allocation2 + $0x80] sm:$0xff] %vm330_vm0, %v2122_v31 }
  0x20   : > { %384 = vst.msk [vmem:[#allocation2 + $0x20] sm:$0xff] %vm379_vm1, %v2330_v30  ;;  %v2348_v34 = vld [vmem:[%s2195_s28 + $0x3a] sm:$0xff]  ;;  %v2366_v36 = vld [vmem:[%s2195_s28 + $0x42] sm:$0xff]  ;;  %v2371_v37 = vld [vmem:[%s2195_s28 + $0x52] sm:$0xff] }
  0x21   : > { %348 = vst.msk [vmem:[#allocation2 + $0x88] sm:$0xff] %vm330_vm0, %v2122_v31  ;;  %v2386_v39 = vld [vmem:[%s2195_s28 + $0x62] sm:$0xff]  ;;  %v2389_v40 = vld [vmem:[%s2195_s28 + $0x5a] sm:$0xff]  ;;  %v2395_v41 = vld [vmem:[%s2195_s28 + $0x6a] sm:$0xff] }
  0x22   : > { %349 = vst.msk [vmem:[#allocation2 + $0x90] sm:$0xff] %vm330_vm0, %v2122_v31  ;;  %v357_v42 = vld [vmem:[%s2195_s28 + $0x10] sm:$0xff]  ;;  %v355_v43 = vld [vmem:[%s2195_s28] sm:$0xff]  ;;  %v2409_v44 = vld [vmem:[%s2195_s28 + $0x28] sm:$0xff] }
  0x23   : > { %350 = vst.msk [vmem:[#allocation2 + $0x98] sm:$0xff] %vm330_vm0, %v2122_v31  ;;  %v2414_v46 = vld [vmem:[%s2195_s28 + $0x18] sm:$0xff]  ;;  %v356_v49 = vld [vmem:[%s2195_s28 + $0x8] sm:$0xff]  ;;  %v2427_v50 = vld [vmem:[%s2195_s28 + $0x40] sm:$0xff] }
  0x24   : > { %351 = vst.msk [vmem:[#allocation2 + $0xa0] sm:$0xff] %vm330_vm0, %v2122_v31  ;;  %v2417_v47 = vld [vmem:[%s2195_s28 + $0x7a] sm:$0xff]  ;;  %v2420_v48 = vld [vmem:[%s2195_s28 + $0x72] sm:$0xff]  ;;  %v2430_v51 = vld [vmem:[%s2195_s28 + $0x82] sm:$0xff] }
  0x25   : > { %466 = vrot.lane.b32.xlu1 %v2219_v6, %s2120_s29  ;;  %464 = vrot.lane.b32.xlu0 %v2222_v7, %s2120_s29  ;;  %352 = vst.msk [vmem:[#allocation2 + $0xa8] sm:$0xff] %vm330_vm0, %v2122_v31  ;;  %v2435_v52 = vld [vmem:[%s2195_s28 + $0x38] sm:$0xff]  ;;  %v2443_v53 = vld [vmem:[%s2195_s28 + $0x30] sm:$0xff] }
  0x26   : > { %468 = vrot.lane.b32.xlu2 %v2225_v8, %s2120_s29  ;;  %353 = vst.msk [vmem:[#allocation2 + $0xb0] sm:$0xff] %vm330_vm0, %v2122_v31  ;;  %v2448_v54 = vld [vmem:[%s2195_s28 + $0x58] sm:$0xff]  ;;  %v2457_v55 = vld [vmem:[%s2195_s28 + $0x50] sm:$0xff]  ;;  %v2462_v57 = vld [vmem:[%s2195_s28 + $0x48] sm:$0xff] }
  0x27   : > { %354 = vst.msk [vmem:[#allocation2 + $0xb8] sm:$0xff] %vm330_vm0, %v2122_v31  ;;  %v2465_v58 = vld [vmem:[%s2195_s28 + $0x92] sm:$0xff]  ;;  %v2468_v59 = vld [vmem:[%s2195_s28 + $0x8a] sm:$0xff]  ;;  %v2477_v61 = vld [vmem:[%s2195_s28 + $0x9a] sm:$0xff]  ;;  %vm1414_vm0 = vcmask 260320  }
  0x28   : > { %382 = vst.msk [vmem:[#allocation2 + $0x10] sm:$0xff] %vm379_vm1, %v357_v42  ;;  %v2472_v60 = vld [vmem:[%s2195_s28 + $0x70] sm:$0xff]  ;;  %v2491_v0 = vld [vmem:[%s2195_s28 + $0x68] sm:$0xff]  ;;  %v2495_v4 = vld [vmem:[%s2195_s28 + $0x60] sm:$0xff] }
  0x29   : > { %380 = vst.msk [vmem:[#allocation2] sm:$0xff] %vm379_vm1, %v355_v43  ;;  %v370_v43 = vld [vmem:[%s2195_s28 + $0x78] sm:$0xff] }
  0x2a   : > { %385 = vst.msk [vmem:[#allocation2 + $0x28] sm:$0xff] %vm379_vm1, %v2409_v44 }
  0x2b   : > { %383 = vst.msk [vmem:[#allocation2 + $0x18] sm:$0xff] %vm379_vm1, %v2414_v46 }
  0x2c   : > { %381 = vst.msk [vmem:[#allocation2 + $0x8] sm:$0xff] %vm379_vm1, %v356_v49  ;;  %v580_v49 = vld [vmem:[%s2195_s28 + $0xba] sm:$0x3f] }
  0x2d   : > { %472 = vrot.lane.b32.xlu1 %v2234_v9, %s2120_s29  ;;  %470 = vrot.lane.b32.xlu0 %v2237_v10, %s2120_s29  ;;  %388 = vst.msk [vmem:[#allocation2 + $0x40] sm:$0xff] %vm379_vm1, %v2427_v50 }
  0x2e   : > { %474 = vrot.lane.b32.xlu2 %v2240_v11, %s2120_s29  ;;  %387 = vst.msk [vmem:[#allocation2 + $0x38] sm:$0xff] %vm379_vm1, %v2435_v52 }
  0x2f   : > { %386 = vst.msk [vmem:[#allocation2 + $0x30] sm:$0xff] %vm379_vm1, %v2443_v53 }
  0x30   : > { %391 = vst.msk [vmem:[#allocation2 + $0x58] sm:$0xff] %vm379_vm1, %v2448_v54 }
  0x31   : > { %390 = vst.msk [vmem:[#allocation2 + $0x50] sm:$0xff] %vm379_vm1, %v2457_v55 }
  0x32   : > { %389 = vst.msk [vmem:[#allocation2 + $0x48] sm:$0xff] %vm379_vm1, %v2462_v57 }
  0x33   : > { %394 = vst.msk [vmem:[#allocation2 + $0x70] sm:$0xff] %vm379_vm1, %v2472_v60 }
  0x34   : > { %393 = vst.msk [vmem:[#allocation2 + $0x68] sm:$0xff] %vm379_vm1, %v2491_v0 }
  0x35   : > { %478 = vrot.lane.b32.xlu1 %v2249_v12, %s2120_s29  ;;  %476 = vrot.lane.b32.xlu0 %v2252_v13, %s2120_s29  ;;  %392 = vst.msk [vmem:[#allocation2 + $0x60] sm:$0xff] %vm379_vm1, %v2495_v4 }
  0x36   : > { %480 = vrot.lane.b32.xlu2 %v2255_v14, %s2120_s29  ;;  %395 = vst.msk [vmem:[#allocation2 + $0x78] sm:$0xff] %vm379_vm1, %v370_v43 }
  0x3d   : > { %484 = vrot.lane.b32.xlu1 %v2264_v15, %s2120_s29  ;;  %482 = vrot.lane.b32.xlu0 %v2267_v16, %s2120_s29 }
  0x3e   : > { %486 = vrot.lane.b32.xlu2 %v2271_v17, %s2120_s29 }
  0x45   : > { %490 = vrot.lane.b32.xlu1 %v2280_v18, %s2120_s29  ;;  %488 = vrot.lane.b32.xlu0 %v2283_v19, %s2120_s29 }
  0x46   : > { %492 = vrot.lane.b32.xlu2 %v2286_v20, %s2120_s29 }
  0x4d   : > { %496 = vrot.lane.b32.xlu1 %v2297_v21, %s2120_s29  ;;  %494 = vrot.lane.b32.xlu0 %v2300_v22, %s2120_s29 }
  0x4e   : > { %498 = vrot.lane.b32.xlu2 %v427_v23, %s2120_s29  ;;  %v2498_v23 = vld [vmem:[%s2195_s28 + $0xaa] sm:$0xff] }
  0x55   : > { %605 = vrot.lane.b32.xlu1 %v557_v24, %s2121_s11  ;;  %552 = vrot.lane.b32.xlu0 %v550_v25, %s2120_s29  ;;  %v2501_v24 = vld [vmem:[%s2195_s28 + $0xa2] sm:$0xff] }
  0x56   : > { %607 = vrot.lane.b32.xlu2 %v558_v26, %s2121_s11  ;;  %v2505_v25 = vld [vmem:[%s2195_s28 + $0x88] sm:$0xff]  ;;  %v2510_v26 = vld [vmem:[%s2195_s28 + $0xb2] sm:$0xff] }
  0x57   : > { %397 = vst.msk [vmem:[#allocation2 + $0x88] sm:$0xff] %vm379_vm1, %v2505_v25 }
  0x5d   : > { %611 = vrot.lane.b32.xlu1 %v2320_v27, %s2121_s11  ;;  %609 = vrot.lane.b32.xlu0 %v559_v28, %s2121_s11 }
  0x5e   : > { %613 = vrot.lane.b32.xlu2 %v2324_v29, %s2121_s11 }
  0x65   : > { %617 = vrot.lane.b32.xlu1 %v2340_v32, %s2121_s11  ;;  %615 = vrot.lane.b32.xlu0 %v2343_v33, %s2121_s11 }
  0x66   : > { %619 = vrot.lane.b32.xlu2 %v2348_v34, %s2121_s11 }
  0x6d   : > { %623 = vrot.lane.b32.xlu1 %v2363_v35, %s2121_s11  ;;  %621 = vrot.lane.b32.xlu0 %v2366_v36, %s2121_s11 }
  0x6e   : > { %625 = vrot.lane.b32.xlu2 %v2371_v37, %s2121_s11 }
  0x70   : > { %v461_v38 = vpop.permute.xlu2 %460 }
  0x71   : > { %529 = vst.msk [vmem:[#allocation2 + $0x20] sm:$0xff] %vm524_vm2, %v461_v38  ;;  %v2524_v38 = vld [vmem:[%s2195_s28 + $0x80] sm:$0xff] }
  0x72   : > { %396 = vst.msk [vmem:[#allocation2 + $0x80] sm:$0xff] %vm379_vm1, %v2524_v38 }
  0x75   : > { %629 = vrot.lane.b32.xlu1 %v2386_v39, %s2121_s11  ;;  %627 = vrot.lane.b32.xlu0 %v2389_v40, %s2121_s11 }
  0x76   : > { %631 = vrot.lane.b32.xlu2 %v2395_v41, %s2121_s11 }
  0x78   : > { %v463_v45 = vpop.permute.xlu2 %462 }
  0x79   : > { %530 = vst.msk [vmem:[#allocation2 + $0x28] sm:$0xff] %vm524_vm2, %v463_v45  ;;  %v703_v45 = vld [vmem:[%s2310_s10] sm:$0x3] }
  0x7d   : > { %635 = vrot.lane.b32.xlu1 %v2417_v47, %s2121_s11  ;;  %633 = vrot.lane.b32.xlu0 %v2420_v48, %s2121_s11 }
  0x7e   : > { %637 = vrot.lane.b32.xlu2 %v2430_v51, %s2121_s11 }
  0x80   : > { %v469_v56 = vpop.permute.xlu2 %468 }
  0x81   : > { %533 = vst.msk [vmem:[#allocation2 + $0x40] sm:$0xff] %vm524_vm2, %v469_v56  ;;  %v2532_v56 = vld [vmem:[%s2195_s28 + $0xa0] sm:$0xff] }
  0x82   : > { %400 = vst.msk [vmem:[#allocation2 + $0xa0] sm:$0xff] %vm379_vm1, %v2532_v56 }
  0x85   : > { %641 = vrot.lane.b32.xlu1 %v2465_v58, %s2121_s11  ;;  %639 = vrot.lane.b32.xlu0 %v2468_v59, %s2121_s11 }
  0x86   : > { %643 = vrot.lane.b32.xlu2 %v2477_v61, %s2121_s11 }
  0x87   : > { %v457_v62 = vpop.permute.xlu1 %456  ;;  %v453_v63 = vpop.permute.xlu0 %452 }
  0x88   : > { %527 = vst.msk [vmem:[#allocation2 + $0x10] sm:$0xff] %vm524_vm2, %v457_v62  ;;  %v475_v1 = vpop.permute.xlu2 %474 }
  0x89   : > { %525 = vst.msk [vmem:[#allocation2] sm:$0xff] %vm524_vm2, %v453_v63 }
  0x8a   : > { %536 = vst.msk [vmem:[#allocation2 + $0x58] sm:$0xff] %vm524_vm2, %v475_v1  ;;  %v2545_v1 = vld [vmem:[%s2195_s28 + $0x98] sm:$0xff] }
  0x8b   : > { %399 = vst.msk [vmem:[#allocation2 + $0x98] sm:$0xff] %vm379_vm1, %v2545_v1 }
  0x8d   : > { %647 = vrot.lane.b32.xlu1 %v2498_v23, %s2121_s11  ;;  %645 = vrot.lane.b32.xlu0 %v2501_v24, %s2121_s11 }
  0x8e   : > { %649 = vrot.lane.b32.xlu2 %v2510_v26, %s2121_s11 }
  0x8f   : > { %v459_v28 = vpop.permute.xlu1 %458  ;;  %v455_v31 = vpop.permute.xlu0 %454 }
  0x90   : > { %528 = vst.msk [vmem:[#allocation2 + $0x18] sm:$0xff] %vm524_vm2, %v459_v28  ;;  %v481_v42 = vpop.permute.xlu2 %480 }
  0x91   : > { %526 = vst.msk [vmem:[#allocation2 + $0x8] sm:$0xff] %vm524_vm2, %v455_v31  ;;  %v2549_v31 = vld [vmem:[%s2195_s28 + $0x90] sm:$0xff] }
  0x92   : > { %539 = vst.msk [vmem:[#allocation2 + $0x70] sm:$0xff] %vm524_vm2, %v481_v42  ;;  %v2553_v42 = vld [vmem:[%s2195_s28 + $0xb8] sm:$0xff] }
  0x93   : > { %398 = vst.msk [vmem:[#allocation2 + $0x90] sm:$0xff] %vm379_vm1, %v2549_v31 }
  0x94   : > { %403 = vst.msk [vmem:[#allocation2 + $0xb8] sm:$0xff] %vm379_vm1, %v2553_v42 }
  0x95   : > { %705 = vrot.lane.b32.xlu1 %v703_v45, %s2121_s11  ;;  %651 = vrot.lane.b32.xlu0 %v580_v49, %s2121_s11  ;;  %v377_v49 = vld [vmem:[%s2195_s28 + $0xb0] sm:$0xff] }
  0x96   : > { %752 = vrot.lane.b32.xlu2 %v2414_v46, %s2123_s12  ;;  %402 = vst.msk [vmem:[#allocation2 + $0xb0] sm:$0xff] %vm379_vm1, %v377_v49 }
  0x97   : > { %v467_v62 = vpop.permute.xlu1 %466  ;;  %v465_v63 = vpop.permute.xlu0 %464 }
  0x98   : > { %532 = vst.msk [vmem:[#allocation2 + $0x38] sm:$0xff] %vm524_vm2, %v467_v62  ;;  %v487_v28 = vpop.permute.xlu2 %486 }
  0x99   : > { %531 = vst.msk [vmem:[#allocation2 + $0x30] sm:$0xff] %vm524_vm2, %v465_v63  ;;  %v2571_v63 = vld [vmem:[%s2195_s28 + $0xa8] sm:$0xff] }
  0x9a   : > { %542 = vst.msk [vmem:[#allocation2 + $0x88] sm:$0xff] %vm524_vm2, %v487_v28 }
  0x9b   : > { %401 = vst.msk [vmem:[#allocation2 + $0xa8] sm:$0xff] %vm379_vm1, %v2571_v63  ;;  %vm1134_vm1 = vcmask 193696  }
  0x9d   : > { %756 = vrot.lane.b32.xlu1 %v2409_v44, %s2123_s12  ;;  %754 = vrot.lane.b32.xlu0 %v2330_v30, %s2123_s12 }
  0x9e   : > { %758 = vrot.lane.b32.xlu2 %v2443_v53, %s2123_s12 }
  0x9f   : > { %v473_v46 = vpop.permute.xlu1 %472  ;;  %v471_v45 = vpop.permute.xlu0 %470 }
  0xa0   : > { %535 = vst.msk [vmem:[#allocation2 + $0x50] sm:$0xff] %vm524_vm2, %v473_v46  ;;  %v493_v62 = vpop.permute.xlu2 %492 }
  0xa1   : > { %534 = vst.msk [vmem:[#allocation2 + $0x48] sm:$0xff] %vm524_vm2, %v471_v45 }
  0xa2   : > { %545 = vst.msk [vmem:[#allocation2 + $0xa0] sm:$0xff] %vm524_vm2, %v493_v62 }
  0xa5   : > { %762 = vrot.lane.b32.xlu1 %v2427_v50, %s2123_s12  ;;  %760 = vrot.lane.b32.xlu0 %v2435_v52, %s2123_s12 }
  0xa6   : > { %764 = vrot.lane.b32.xlu2 %v2462_v57, %s2123_s12 }
  0xa7   : > { %v479_v30 = vpop.permute.xlu1 %478  ;;  %v477_v44 = vpop.permute.xlu0 %476 }
  0xa8   : > { %538 = vst.msk [vmem:[#allocation2 + $0x68] sm:$0xff] %vm524_vm2, %v479_v30  ;;  %v499_v28 = vpop.permute.xlu2 %498 }
  0xa9   : > { %537 = vst.msk [vmem:[#allocation2 + $0x60] sm:$0xff] %vm524_vm2, %v477_v44 }
  0xaa   : > { %549 = vst.msk [vmem:[#allocation2 + $0xb8] sm:$0x7f] %vm548_vm3, %v499_v28  ;;  %vm1560_vm3 = vcmask 292096  }
  0xad   : > { %768 = vrot.lane.b32.xlu1 %v2448_v54, %s2123_s12  ;;  %766 = vrot.lane.b32.xlu0 %v2457_v55, %s2123_s12 }
  0xae   : > { %770 = vrot.lane.b32.xlu2 %v2495_v4, %s2123_s12 }
  0xaf   : > { %v485_v46 = vpop.permute.xlu1 %484  ;;  %v483_v45 = vpop.permute.xlu0 %482 }
  0xb0   : > { %541 = vst.msk [vmem:[#allocation2 + $0x80] sm:$0xff] %vm524_vm2, %v485_v46  ;;  %v608_v62 = vpop.permute.xlu2 %607 }
  0xb1   : > { %540 = vst.msk [vmem:[#allocation2 + $0x78] sm:$0xff] %vm524_vm2, %v483_v45 }
  0xb2   : > { %679 = vst.msk [vmem:[#allocation2 + $0x8] sm:$0xff] %vm677_vm4, %v608_v62  ;;  %v2620_v62 = vld [vmem:[%s2310_s10] sm:$0xff] }
  0xb5   : > { %774 = vrot.lane.b32.xlu1 %v2472_v60, %s2123_s12  ;;  %772 = vrot.lane.b32.xlu0 %v2491_v0, %s2123_s12 }
  0xb6   : > { %776 = vrot.lane.b32.xlu2 %v370_v43, %s2123_s12 }
  0xb7   : > { %v491_v54 = vpop.permute.xlu1 %490  ;;  %v489_v30 = vpop.permute.xlu0 %488 }
  0xb8   : > { %544 = vst.msk [vmem:[#allocation2 + $0x98] sm:$0xff] %vm524_vm2, %v491_v54  ;;  %v614_v44 = vpop.permute.xlu2 %613 }
  0xb9   : > { %543 = vst.msk [vmem:[#allocation2 + $0x90] sm:$0xff] %vm524_vm2, %v489_v30 }
  0xba   : > { %682 = vst.msk [vmem:[#allocation2 + $0x20] sm:$0xff] %vm677_vm4, %v614_v44 }
  0xbd   : > { %780 = vrot.lane.b32.xlu1 %v2505_v25, %s2123_s12  ;;  %778 = vrot.lane.b32.xlu0 %v2524_v38, %s2123_s12 }
  0xbe   : > { %782 = vrot.lane.b32.xlu2 %v2549_v31, %s2123_s12 }
  0xbf   : > { %v497_v28 = vpop.permute.xlu1 %496  ;;  %v495_v46 = vpop.permute.xlu0 %494 }
  0xc0   : > { %547 = vst.msk [vmem:[#allocation2 + $0xb0] sm:$0xff] %vm524_vm2, %v497_v28  ;;  %v620_v43 = vpop.permute.xlu2 %619  ;;  %v2630_v28 = vld [vmem:[%s2310_s10 + $0x10] sm:$0xff] }
  0xc1   : > { %546 = vst.msk [vmem:[#allocation2 + $0xa8] sm:$0xff] %vm524_vm2, %v495_v46  ;;  %v2633_v46 = vld [vmem:[%s2310_s10 + $0x8] sm:$0xff]  ;;  %vm1159_vm2 = vcmask 189600  }
  0xc2   : > { %685 = vst.msk [vmem:[#allocation2 + $0x38] sm:$0xff] %vm677_vm4, %v620_v43 }
  0xc5   : > { %786 = vrot.lane.b32.xlu1 %v2532_v56, %s2123_s12  ;;  %784 = vrot.lane.b32.xlu0 %v2545_v1, %s2123_s12 }
  0xc6   : > { %788 = vrot.lane.b32.xlu2 %v2571_v63, %s2123_s12 }
  0xc7   : > { %v606_v25 = vpop.permute.xlu1 %605  ;;  %v553_v38 = vpop.permute.xlu0 %552 }
  0xc8   : > { %678 = vst.msk [vmem:[#allocation2] sm:$0xff] %vm677_vm4, %v606_v25  ;;  %v626_v45 = vpop.permute.xlu2 %625 }
  0xc9   : > { %556 = vst.msk [vmem:[#allocation2 + $0xbf] sm:$0x1] %vm555_vm5, %v553_v38 }
  0xca   : > { %688 = vst.msk [vmem:[#allocation2 + $0x50] sm:$0xff] %vm677_vm4, %v626_v45 }
  0xcd   : > { %792 = vrot.lane.b32.xlu1 %v2553_v42, %s2123_s12  ;;  %790 = vrot.lane.b32.xlu0 %v377_v49, %s2123_s12 }
  0xce   : > { %843 = vrot.lane.b32.xlu2 %v2620_v62, %s2123_s12 }
  0xcf   : > { %v612_v54 = vpop.permute.xlu1 %611  ;;  %v610_v30 = vpop.permute.xlu0 %609 }
  0xd0   : > { %681 = vst.msk [vmem:[#allocation2 + $0x18] sm:$0xff] %vm677_vm4, %v612_v54  ;;  %v632_v44 = vpop.permute.xlu2 %631 }
  0xd1   : > { %680 = vst.msk [vmem:[#allocation2 + $0x10] sm:$0xff] %vm677_vm4, %v610_v30 }
  0xd2   : > { %691 = vst.msk [vmem:[#allocation2 + $0x68] sm:$0xff] %vm677_vm4, %v632_v44 }
  0xd5   : > { %847 = vrot.lane.b32.xlu1 %v2630_v28, %s2123_s12  ;;  %845 = vrot.lane.b32.xlu0 %v2633_v46, %s2123_s12 }
  0xd6   : > { %897 = vrot.lane.b32.xlu2 %v2207_v3, %s2124_s13 }
  0xd7   : > { %v618_v49 = vpop.permute.xlu1 %617  ;;  %v616_v43 = vpop.permute.xlu0 %615 }
  0xd8   : > { %684 = vst.msk [vmem:[#allocation2 + $0x30] sm:$0xff] %vm677_vm4, %v618_v49  ;;  %v638_v25 = vpop.permute.xlu2 %637 }
  0xd9   : > { %683 = vst.msk [vmem:[#allocation2 + $0x28] sm:$0xff] %vm677_vm4, %v616_v43  ;;  %v875_v43 = vld [vmem:[%s2195_s28 + $0xb9] sm:$0x7f] }
  0xda   : > { %694 = vst.msk [vmem:[#allocation2 + $0x80] sm:$0xff] %vm677_vm4, %v638_v25  ;;  %v986_v25 = vld [vmem:[%s2310_s10 + $0x18] sm:$0x1] }
  0xdd   : > { %901 = vrot.lane.b32.xlu1 %v2211_v5, %s2124_s13  ;;  %899 = vrot.lane.b32.xlu0 %v2202_v2, %s2124_s13 }
  0xde   : > { %903 = vrot.lane.b32.xlu2 %v2222_v7, %s2124_s13 }
  0xdf   : > { %v624_v38 = vpop.permute.xlu1 %623  ;;  %v622_v45 = vpop.permute.xlu0 %621 }
  0xe0   : > { %687 = vst.msk [vmem:[#allocation2 + $0x48] sm:$0xff] %vm677_vm4, %v624_v38  ;;  %v644_v3 = vpop.permute.xlu2 %643 }
  0xe1   : > { %686 = vst.msk [vmem:[#allocation2 + $0x40] sm:$0xff] %vm677_vm4, %v622_v45 }
  0xe2   : > { %697 = vst.msk [vmem:[#allocation2 + $0x98] sm:$0xff] %vm677_vm4, %v644_v3 }
  0xe5   : > { %907 = vrot.lane.b32.xlu1 %v2225_v8, %s2124_s13  ;;  %905 = vrot.lane.b32.xlu0 %v2219_v6, %s2124_s13 }
  0xe6   : > { %909 = vrot.lane.b32.xlu2 %v2237_v10, %s2124_s13 }
  0xe7   : > { %v630_v5 = vpop.permute.xlu1 %629  ;;  %v628_v2 = vpop.permute.xlu0 %627 }
  0xe8   : > { %690 = vst.msk [vmem:[#allocation2 + $0x60] sm:$0xff] %vm677_vm4, %v630_v5  ;;  %v650_v54 = vpop.permute.xlu2 %649 }
  0xe9   : > { %689 = vst.msk [vmem:[#allocation2 + $0x58] sm:$0xff] %vm677_vm4, %v628_v2 }
  0xea   : > { %700 = vst.msk [vmem:[#allocation2 + $0xb0] sm:$0xff] %vm677_vm4, %v650_v54 }
  0xed   : > { %913 = vrot.lane.b32.xlu1 %v2240_v11, %s2124_s13  ;;  %911 = vrot.lane.b32.xlu0 %v2234_v9, %s2124_s13 }
  0xee   : > { %915 = vrot.lane.b32.xlu2 %v2252_v13, %s2124_s13 }
  0xef   : > { %v636_v8 = vpop.permute.xlu1 %635  ;;  %v634_v30 = vpop.permute.xlu0 %633 }
  0xf0   : > { %693 = vst.msk [vmem:[#allocation2 + $0x78] sm:$0xff] %vm677_vm4, %v636_v8  ;;  %v753_v10 = vpop.permute.xlu2 %752 }
  0xf1   : > { %692 = vst.msk [vmem:[#allocation2 + $0x70] sm:$0xff] %vm677_vm4, %v634_v30 }
  0xf2   : > { %816 = vst.msk [vmem:[#allocation2] sm:$0xff] %vm815_vm6, %v753_v10 }
  0xf5   : > { %919 = vrot.lane.b32.xlu1 %v2255_v14, %s2124_s13  ;;  %917 = vrot.lane.b32.xlu0 %v2249_v12, %s2124_s13 }
  0xf6   : > { %921 = vrot.lane.b32.xlu2 %v2267_v16, %s2124_s13 }
  0xf7   : > { %v642_v9 = vpop.permute.xlu1 %641  ;;  %v640_v11 = vpop.permute.xlu0 %639 }
  0xf8   : > { %696 = vst.msk [vmem:[#allocation2 + $0x90] sm:$0xff] %vm677_vm4, %v642_v9  ;;  %v759_v44 = vpop.permute.xlu2 %758  ;;  %v1308_v9 = vld [vmem:[%s2195_s28 + $0x41] sm:$0xff] }
  0xf9   : > { %695 = vst.msk [vmem:[#allocation2 + $0x88] sm:$0xff] %vm677_vm4, %v640_v11  ;;  %v1313_v11 = vld [vmem:[%s2195_s28 + $0x69] sm:$0xff] }
  0xfa   : > { %819 = vst.msk [vmem:[#allocation2 + $0x18] sm:$0xff] %vm815_vm6, %v759_v44 }
  0xfd   : > { %925 = vrot.lane.b32.xlu1 %v2271_v17, %s2124_s13  ;;  %923 = vrot.lane.b32.xlu0 %v2264_v15, %s2124_s13 }
  0xfe   : > { %927 = vrot.lane.b32.xlu2 %v2283_v19, %s2124_s13 }
  0xff   : > { %v648_v14 = vpop.permute.xlu1 %647  ;;  %v646_v12 = vpop.permute.xlu0 %645 }
 0x100   : > { %699 = vst.msk [vmem:[#allocation2 + $0xa8] sm:$0xff] %vm677_vm4, %v648_v14  ;;  %v765_v16 = vpop.permute.xlu2 %764  ;;  %v1454_v14 = vld [vmem:[%s2195_s28 + $0x42] sm:$0xff] }
 0x101   : > { %698 = vst.msk [vmem:[#allocation2 + $0xa0] sm:$0xff] %vm677_vm4, %v646_v12  ;;  %vm1793_vm4 = vcmask 1040384  }
 0x102   : > { %822 = vst.msk [vmem:[#allocation2 + $0x30] sm:$0xff] %vm815_vm6, %v765_v16  ;;  %v1637_v16 = vld [vmem:[%s3145_s2 + $0x78] sm:$0xff] }
 0x103   : > { %1638 = vmatpush.msra.mxu0 %v1637_v16  ;;  %1982 = vmatpush.msra.mxu1 %v1637_v16 }
 0x104   : > { %1983 = vmatpush.msra.mxu2 %v1637_v16  ;;  %1984 = vmatpush.msra.mxu3 %v1637_v16  ;;  %v1456_v16 = vld [vmem:[%s2195_s28 + $0x52] sm:$0xff] }
 0x105   : > { %931 = vrot.lane.b32.xlu1 %v2286_v20, %s2124_s13  ;;  %929 = vrot.lane.b32.xlu0 %v2280_v18, %s2124_s13 }
 0x106   : > { %933 = vrot.lane.b32.xlu2 %v2300_v22, %s2124_s13 }
 0x107   : > { %v706_v15 = vpop.permute.xlu1 %705  ;;  %v652_v17 = vpop.permute.xlu0 %651 }
 0x108   : > { %709 = vst.msk [vmem:[#allocation2 + $0xbe] sm:$0x3] %vm708_vm7, %v706_v15  ;;  %v771_v49 = vpop.permute.xlu2 %770  ;;  %v1636_v15 = vld [vmem:[%s3145_s2 + $0x70] sm:$0xff] }
 0x109   : > { %702 = vst.msk [vmem:[#allocation2 + $0xb8] sm:$0x3f] %vm701_vm8, %v652_v17  ;;  %v1319_v17 = vld [vmem:[%s2195_s28 + $0x99] sm:$0xff]  ;;  %1639 = vmatpush.msra.mxu0 %v1636_v15  ;;  %1985 = vmatpush.msra.mxu1 %v1636_v15 }
 0x10a   : > { %825 = vst.msk [vmem:[#allocation2 + $0x48] sm:$0xff] %vm815_vm6, %v771_v49  ;;  %v1323_v49 = vld [vmem:[%s2195_s28 + $0xb9] sm:$0x7f]  ;;  %1986 = vmatpush.msra.mxu2 %v1636_v15  ;;  %1987 = vmatpush.msra.mxu3 %v1636_v15 }
 0x10d   : > { %937 = vrot.lane.b32.xlu1 %v875_v43, %s2124_s13  ;;  %935 = vrot.lane.b32.xlu0 %v2297_v21, %s2124_s13  ;;  %v1635_v43 = vld [vmem:[%s3145_s2 + $0x68] sm:$0xff] }
 0x10e   : > { %991 = vrot.lane.b32.xlu2 %v2620_v62, %s2124_s13  ;;  %1640 = vmatpush.msra.mxu0 %v1635_v43 }
 0x10f   : > { %v757_v18 = vpop.permute.xlu1 %756  ;;  %v755_v20 = vpop.permute.xlu0 %754  ;;  %1988 = vmatpush.msra.mxu1 %v1635_v43  ;;  %1989 = vmatpush.msra.mxu2 %v1635_v43 }
 0x110   : > { %818 = vst.msk [vmem:[#allocation2 + $0x10] sm:$0xff] %vm815_vm6, %v757_v18  ;;  %v777_v22 = vpop.permute.xlu2 %776  ;;  %1990 = vmatpush.msra.mxu3 %v1635_v43 }
 0x111   : > { %817 = vst.msk [vmem:[#allocation2 + $0x8] sm:$0xff] %vm815_vm6, %v755_v20 }
 0x112   : > { %828 = vst.msk [vmem:[#allocation2 + $0x60] sm:$0xff] %vm815_vm6, %v777_v22 }
 0x115   : > { %995 = vrot.lane.b32.xlu1 %v2630_v28, %s2124_s13  ;;  %993 = vrot.lane.b32.xlu0 %v2633_v46, %s2124_s13 }
 0x116   : > { %997 = vrot.lane.b32.xlu2 %v986_v25, %s2124_s13  ;;  %v1633_v25 = vld [vmem:[%s3145_s2 + $0x58] sm:$0xff] }
 0x117   : > { %v763_v21 = vpop.permute.xlu1 %762  ;;  %v761_v38 = vpop.permute.xlu0 %760 }
 0x118   : > { %821 = vst.msk [vmem:[#allocation2 + $0x28] sm:$0xff] %vm815_vm6, %v763_v21  ;;  %v783_v45 = vpop.permute.xlu2 %782  ;;  %v1632_v21 = vld [vmem:[%s3145_s2 + $0x50] sm:$0xff] }
 0x119   : > { %820 = vst.msk [vmem:[#allocation2 + $0x20] sm:$0xff] %vm815_vm6, %v761_v38  ;;  %v1631_v38 = vld [vmem:[%s3145_s2 + $0x48] sm:$0xff] }
 0x11a   : > { %831 = vst.msk [vmem:[#allocation2 + $0x78] sm:$0xff] %vm815_vm6, %v783_v45 }
 0x11d   : > { %1052 = vrot.lane.b32.xlu1 %v2324_v29, %s2125_s14  ;;  %1050 = vrot.lane.b32.xlu0 %v2320_v27, %s2125_s14 }
 0x11e   : > { %1054 = vrot.lane.b32.xlu2 %v2343_v33, %s2125_s14 }
 0x11f   : > { %v769_v3 = vpop.permute.xlu1 %768  ;;  %v767_v5 = vpop.permute.xlu0 %766 }
 0x120   : > { %824 = vst.msk [vmem:[#allocation2 + $0x40] sm:$0xff] %vm815_vm6, %v769_v3  ;;  %v789_v2 = vpop.permute.xlu2 %788 }
 0x121   : > { %823 = vst.msk [vmem:[#allocation2 + $0x38] sm:$0xff] %vm815_vm6, %v767_v5 }
 0x122   : > { %834 = vst.msk [vmem:[#allocation2 + $0x90] sm:$0xff] %vm815_vm6, %v789_v2  ;;  %v1630_v2 = vld [vmem:[%s3145_s2 + $0x40] sm:$0xff] }
 0x125   : > { %1058 = vrot.lane.b32.xlu1 %v2348_v34, %s2125_s14  ;;  %1056 = vrot.lane.b32.xlu0 %v2340_v32, %s2125_s14 }
 0x126   : > { %1060 = vrot.lane.b32.xlu2 %v2366_v36, %s2125_s14 }
 0x127   : > { %v775_v29 = vpop.permute.xlu1 %774  ;;  %v773_v27 = vpop.permute.xlu0 %772 }
 0x128   : > { %827 = vst.msk [vmem:[#allocation2 + $0x58] sm:$0xff] %vm815_vm6, %v775_v29  ;;  %v844_v33 = vpop.permute.xlu2 %843  ;;  %v1629_v29 = vld [vmem:[%s3145_s2 + $0x38] sm:$0xff] }
 0x129   : > { %826 = vst.msk [vmem:[#allocation2 + $0x50] sm:$0xff] %vm815_vm6, %v773_v27  ;;  %v1627_v27 = vld [vmem:[%s3145_s2 + $0x28] sm:$0xff] }
 0x12a   : > { %852 = vst.msk [vmem:[#allocation2 + $0xa8] sm:$0xff] %vm815_vm6, %v844_v33 }
 0x12d   : > { %1064 = vrot.lane.b32.xlu1 %v2371_v37, %s2125_s14  ;;  %1062 = vrot.lane.b32.xlu0 %v2363_v35, %s2125_s14 }
 0x12e   : > { %1066 = vrot.lane.b32.xlu2 %v2389_v40, %s2125_s14 }
 0x12f   : > { %v781_v54 = vpop.permute.xlu1 %780  ;;  %v779_v8 = vpop.permute.xlu0 %778 }
 0x130   : > { %830 = vst.msk [vmem:[#allocation2 + $0x70] sm:$0xff] %vm815_vm6, %v781_v54  ;;  %v898_v36 = vpop.permute.xlu2 %897 }
 0x131   : > { %829 = vst.msk [vmem:[#allocation2 + $0x68] sm:$0xff] %vm815_vm6, %v779_v8 }
 0x132   : > { %961 = vst.msk [vmem:[#allocation2] sm:$0xff] %vm960_vm9, %v898_v36  ;;  %v1626_v36 = vld [vmem:[%s3145_s2 + $0x20] sm:$0xff] }
 0x135   : > { %1070 = vrot.lane.b32.xlu1 %v2395_v41, %s2125_s14  ;;  %1068 = vrot.lane.b32.xlu0 %v2386_v39, %s2125_s14 }
 0x136   : > { %1072 = vrot.lane.b32.xlu2 %v2420_v48, %s2125_s14 }
 0x137   : > { %v787_v35 = vpop.permute.xlu1 %786  ;;  %v785_v37 = vpop.permute.xlu0 %784 }
 0x138   : > { %833 = vst.msk [vmem:[#allocation2 + $0x88] sm:$0xff] %vm815_vm6, %v787_v35  ;;  %v904_v40 = vpop.permute.xlu2 %903  ;;  %v1028_v35 = vld [vmem:[%s2195_s28 + $0xba] sm:$0x3f] }
 0x139   : > { %832 = vst.msk [vmem:[#allocation2 + $0x80] sm:$0xff] %vm815_vm6, %v785_v37  ;;  %v1624_v37 = vld [vmem:[%s3145_s2 + $0x10] sm:$0xff] }
 0x13a   : > { %964 = vst.msk [vmem:[#allocation2 + $0x18] sm:$0xff] %vm960_vm9, %v904_v40  ;;  %v1623_v40 = vld [vmem:[%s3145_s2 + $0x8] sm:$0xff] }
 0x13d   : > { %1076 = vrot.lane.b32.xlu1 %v2430_v51, %s2125_s14  ;;  %1074 = vrot.lane.b32.xlu0 %v2417_v47, %s2125_s14 }
 0x13e   : > { %1078 = vrot.lane.b32.xlu2 %v2468_v59, %s2125_s14 }
 0x13f   : > { %v793_v30 = vpop.permute.xlu1 %792  ;;  %v791_v10 = vpop.permute.xlu0 %790 }
 0x140   : > { %836 = vst.msk [vmem:[#allocation2 + $0xa0] sm:$0xff] %vm815_vm6, %v793_v30  ;;  %v910_v48 = vpop.permute.xlu2 %909 }
 0x141   : > { %835 = vst.msk [vmem:[#allocation2 + $0x98] sm:$0xff] %vm815_vm6, %v791_v10 }
 0x142   : > { %967 = vst.msk [vmem:[#allocation2 + $0x30] sm:$0xff] %vm960_vm9, %v910_v48  ;;  %v1622_v48 = vld [vmem:[%s3145_s2] sm:$0xff] }
 0x145   : > { %1342 = vrot.lane.b32.xlu1 %v2222_v7, %s2126_s22  ;;  %1197 = vrot.lane.b32.xlu0 %v2443_v53, %s2127_s23 }
 0x146   : > { %1488 = vrot.lane.b32.xlu2 %v2340_v32, %s2128_s24 }
 0x147   : > { %v848_v47 = vpop.permute.xlu1 %847  ;;  %v846_v51 = vpop.permute.xlu0 %845 }
 0x148   : > { %854 = vst.msk [vmem:[#allocation2 + $0xb8] sm:$0xff] %vm815_vm6, %v848_v47  ;;  %v916_v59 = vpop.permute.xlu2 %915  ;;  %v1314_v47 = vld [vmem:[%s2195_s28 + $0x71] sm:$0xff] }
 0x149   : > { %853 = vst.msk [vmem:[#allocation2 + $0xb0] sm:$0xff] %vm815_vm6, %v846_v51  ;;  %v1309_v51 = vld [vmem:[%s2195_s28 + $0x49] sm:$0xff] }
 0x14a   : > { %970 = vst.msk [vmem:[#allocation2 + $0x48] sm:$0xff] %vm960_vm9, %v916_v59 }
 0x14d   : > { %1209 = vrot.lane.b32.xlu1 %v2495_v4, %s2127_s23  ;;  %1199 = vrot.lane.b32.xlu0 %v2435_v52, %s2127_s23 }
 0x14e   : > { %1344 = vrot.lane.b32.xlu2 %v2219_v6, %s2126_s22 }
 0x14f   : > { %v902_v7 = vpop.permute.xlu1 %901  ;;  %v900_v53 = vpop.permute.xlu0 %899 }
 0x150   : > { %963 = vst.msk [vmem:[#allocation2 + $0x10] sm:$0xff] %vm960_vm9, %v902_v7  ;;  %v922_v32 = vpop.permute.xlu2 %921 }
 0x151   : > { %962 = vst.msk [vmem:[#allocation2 + $0x8] sm:$0xff] %vm960_vm9, %v900_v53  ;;  %v1455_v53 = vld [vmem:[%s2195_s28 + $0x4a] sm:$0xff] }
 0x152   : > { %973 = vst.msk [vmem:[#allocation2 + $0x60] sm:$0xff] %vm960_vm9, %v922_v32  ;;  %v1460_v32 = vld [vmem:[%s2195_s28 + $0x72] sm:$0xff] }
 0x155   : > { %1221 = vrot.lane.b32.xlu1 %v2549_v31, %s2127_s23  ;;  %1354 = vrot.lane.b32.xlu0 %v2252_v13, %s2126_s22 }
 0x156   : > { %1490 = vrot.lane.b32.xlu2 %v2348_v34, %s2128_s24 }
 0x157   : > { %v908_v4 = vpop.permute.xlu1 %907  ;;  %v906_v52 = vpop.permute.xlu0 %905 }
 0x158   : > { %966 = vst.msk [vmem:[#allocation2 + $0x28] sm:$0xff] %vm960_vm9, %v908_v4  ;;  %v928_v6 = vpop.permute.xlu2 %927 }
 0x159   : > { %965 = vst.msk [vmem:[#allocation2 + $0x20] sm:$0xff] %vm960_vm9, %v906_v52 }
 0x15a   : > { %976 = vst.msk [vmem:[#allocation2 + $0x78] sm:$0xff] %vm960_vm9, %v928_v6  ;;  %v1320_v6 = vld [vmem:[%s2195_s28 + $0xa1] sm:$0xff] }
 0x15d   : > { %1366 = vrot.lane.b32.xlu1 %v2283_v19, %s2126_s22  ;;  %1500 = vrot.lane.b32.xlu0 %v2386_v39, %s2128_s24 }
 0x15e   : > { %1512 = vrot.lane.b32.xlu2 %v2465_v58, %s2128_s24 }
 0x15f   : > { %v914_v31 = vpop.permute.xlu1 %913  ;;  %v912_v13 = vpop.permute.xlu0 %911 }
 0x160   : > { %969 = vst.msk [vmem:[#allocation2 + $0x40] sm:$0xff] %vm960_vm9, %v914_v31  ;;  %v934_v34 = vpop.permute.xlu2 %933  ;;  %v1466_v31 = vld [vmem:[%s2195_s28 + $0xa2] sm:$0xff] }
 0x161   : > { %968 = vst.msk [vmem:[#allocation2 + $0x38] sm:$0xff] %vm960_vm9, %v912_v13 }
 0x162   : > { %979 = vst.msk [vmem:[#allocation2 + $0x90] sm:$0xff] %vm960_vm9, %v934_v34 }
 0x165   : > { %1211 = vrot.lane.b32.xlu1 %v2491_v0, %s2127_s23  ;;  %1201 = vrot.lane.b32.xlu0 %v2427_v50, %s2127_s23 }
 0x166   : > { %1084 = vrot.lane.b32.xlu2 %v2501_v24, %s2125_s14 }
 0x167   : > { %v920_v19 = vpop.permute.xlu1 %919  ;;  %v918_v39 = vpop.permute.xlu0 %917 }
 0x168   : > { %972 = vst.msk [vmem:[#allocation2 + $0x58] sm:$0xff] %vm960_vm9, %v920_v19  ;;  %v992_v58 = vpop.permute.xlu2 %991 }
 0x169   : > { %971 = vst.msk [vmem:[#allocation2 + $0x50] sm:$0xff] %vm960_vm9, %v918_v39  ;;  %v1170_v39 = vld [vmem:[%s2195_s28 + $0x78] sm:$0xff] }
 0x16a   : > { %1003 = vst.msk [vmem:[#allocation2 + $0xa7] sm:$0xff] %vm960_vm9, %v992_v58 }
 0x16d   : > { %1088 = vrot.lane.b32.xlu1 %v2510_v26, %s2125_s14  ;;  %1086 = vrot.lane.b32.xlu0 %v2498_v23, %s2125_s14 }
 0x16e   : > { %1346 = vrot.lane.b32.xlu2 %v1308_v9, %s2126_s22 }
 0x16f   : > { %v926_v50 = vpop.permute.xlu1 %925  ;;  %v924_v0 = vpop.permute.xlu0 %923 }
 0x170   : > { %975 = vst.msk [vmem:[#allocation2 + $0x70] sm:$0xff] %vm960_vm9, %v926_v50  ;;  %v998_v24 = vpop.permute.xlu2 %997 }
 0x171   : > { %974 = vst.msk [vmem:[#allocation2 + $0x68] sm:$0xff] %vm960_vm9, %v924_v0 }
 0x172   : > { %1007 = vst.msk [vmem:[#allocation2 + $0xbf] sm:$0x1] %vm1006_vm10, %v998_v24  ;;  %v1023_v24 = vld [vmem:[%s2195_s28 + $0x92] sm:$0xff] }
 0x175   : > { %1223 = vrot.lane.b32.xlu1 %v2545_v1, %s2127_s23  ;;  %1356 = vrot.lane.b32.xlu0 %v1313_v11, %s2126_s22 }
 0x176   : > { %1231 = vrot.lane.b32.xlu2 %v2553_v42, %s2127_s23 }
 0x177   : > { %v932_v26 = vpop.permute.xlu1 %931  ;;  %v930_v23 = vpop.permute.xlu0 %929 }
 0x178   : > { %978 = vst.msk [vmem:[#allocation2 + $0x88] sm:$0xff] %vm960_vm9, %v932_v26  ;;  %v1055_v44 = vpop.permute.xlu2 %1054 }
 0x179   : > { %977 = vst.msk [vmem:[#allocation2 + $0x80] sm:$0xff] %vm960_vm9, %v930_v23 }
 0x17a   : > { %1116 = vst.msk [vmem:[#allocation2 + $0x10] sm:$0xff] %vm1113_vm11, %v1055_v44  ;;  %v1315_v44 = vld [vmem:[%s2195_s28 + $0x79] sm:$0xff] }
 0x17d   : > { %1284 = vrot.lane.b32.xlu1 %v2633_v46, %s2127_s23  ;;  %1282 = vrot.lane.b32.xlu0 %v2620_v62, %s2127_s23 }
 0x17e   : > { %1492 = vrot.lane.b32.xlu2 %v1454_v14, %s2128_s24 }
 0x17f   : > { %v938_v1 = vpop.permute.xlu1 %937  ;;  %v936_v42 = vpop.permute.xlu0 %935 }
 0x180   : > { %982 = vst.msk [vmem:[#allocation2 + $0xa0] sm:$0x7f] %vm981_vm12, %v938_v1  ;;  %v1061_v12 = vpop.permute.xlu2 %1060 }
 0x181   : > { %980 = vst.msk [vmem:[#allocation2 + $0x98] sm:$0xff] %vm960_vm9, %v936_v42 }
 0x182   : > { %1119 = vst.msk [vmem:[#allocation2 + $0x28] sm:$0xff] %vm1113_vm11, %v1061_v12  ;;  %v1461_v12 = vld [vmem:[%s2195_s28 + $0x7a] sm:$0xff] }
 0x185   : > { %1368 = vrot.lane.b32.xlu1 %v1319_v17, %s2126_s22  ;;  %1502 = vrot.lane.b32.xlu0 %v2395_v41, %s2128_s24  ;;  %v1634_v41 = vld [vmem:[%s3145_s2 + $0x60] sm:$0xff] }
 0x186   : > { %1376 = vrot.lane.b32.xlu2 %v1323_v49, %s2126_s22  ;;  %1641 = vmatpush.msra.mxu0 %v1634_v41 }
 0x187   : > { %v996_v18 = vpop.permute.xlu1 %995  ;;  %v994_v20 = vpop.permute.xlu0 %993  ;;  %1991 = vmatpush.msra.mxu1 %v1634_v41  ;;  %1992 = vmatpush.msra.mxu2 %v1634_v41 }
 0x188   : > { %1005 = vst.msk [vmem:[#allocation2 + $0xb7] sm:$0xff] %vm960_vm9, %v996_v18  ;;  %v1067_v22 = vpop.permute.xlu2 %1066  ;;  %1642 = vmatpush.msra.mxu0 %v1633_v25  ;;  %1993 = vmatpush.msra.mxu3 %v1634_v41 }
 0x189   : > { %1004 = vst.msk [vmem:[#allocation2 + $0xaf] sm:$0xff] %vm960_vm9, %v994_v20  ;;  %1994 = vmatpush.msra.mxu1 %v1633_v25  ;;  %1995 = vmatpush.msra.mxu2 %v1633_v25  ;;  %v1467_v20 = vld [vmem:[%s2195_s28 + $0xaa] sm:$0xff] }
 0x18a   : > { %1122 = vst.msk [vmem:[#allocation2 + $0x40] sm:$0xff] %vm1113_vm11, %v1067_v22  ;;  %1643 = vmatpush.msra.mxu0 %v1632_v21  ;;  %1996 = vmatpush.msra.mxu3 %v1633_v25 }
 0x18b   : > { %1997 = vmatpush.msra.mxu1 %v1632_v21  ;;  %1998 = vmatpush.msra.mxu2 %v1632_v21 }
 0x18c   : > { %1644 = vmatpush.msra.mxu0 %v1631_v38  ;;  %1999 = vmatpush.msra.mxu3 %v1632_v21  ;;  %v1024_v21 = vld [vmem:[%s2195_s28 + $0x9a] sm:$0xff] }
 0x18d   : > { %1430 = vrot.lane.b32.xlu1 %v2633_v46, %s2126_s22  ;;  %1428 = vrot.lane.b32.xlu0 %v2620_v62, %s2126_s22 }
 0x18e   : > { %1514 = vrot.lane.b32.xlu2 %v2477_v61, %s2128_s24  ;;  %2000 = vmatpush.msra.mxu1 %v1631_v38  ;;  %v1628_v61 = vld [vmem:[%s3145_s2 + $0x30] sm:$0xff] }
 0x18f   : > { %v1053_v45 = vpop.permute.xlu1 %1052  ;;  %v1051_v3 = vpop.permute.xlu0 %1050  ;;  %1645 = vmatpush.msra.mxu0 %v1630_v2  ;;  %2001 = vmatpush.msra.mxu2 %v1631_v38 }
 0x190   : > { %1115 = vst.msk [vmem:[#allocation2 + $0x8] sm:$0xff] %vm1113_vm11, %v1053_v45  ;;  %v1073_v5 = vpop.permute.xlu2 %1072  ;;  %2003 = vmatpush.msra.mxu1 %v1630_v2  ;;  %2002 = vmatpush.msra.mxu3 %v1631_v38  ;;  %v1171_v38 = vld [vmem:[%s2195_s28 + $0x80] sm:$0xff] }
 0x191   : > { %1114 = vst.msk [vmem:[#allocation2] sm:$0xff] %vm1113_vm11, %v1051_v3  ;;  %1646 = vmatpush.msra.mxu0 %v1629_v29  ;;  %2004 = vmatpush.msra.mxu2 %v1630_v2  ;;  %v1138_v3 = vld [vmem:[%s2310_s10 + $0x10] sm:$0xff] }
 0x192   : > { %1125 = vst.msk [vmem:[#allocation2 + $0x58] sm:$0xff] %vm1113_vm11, %v1073_v5  ;;  %2006 = vmatpush.msra.mxu1 %v1629_v29  ;;  %2005 = vmatpush.msra.mxu3 %v1630_v2 }
 0x193   : > { %1647 = vmatpush.msra.mxu0 %v1628_v61  ;;  %2007 = vmatpush.msra.mxu2 %v1629_v29 }
 0x194   : > { %2009 = vmatpush.msra.mxu1 %v1628_v61  ;;  %2008 = vmatpush.msra.mxu3 %v1629_v29 }
 0x195   : > { %1576 = vrot.lane.b32.xlu1 %v2633_v46, %s2128_s24  ;;  %1574 = vrot.lane.b32.xlu0 %v2620_v62, %s2128_s24 }
 0x196   : > { %1203 = vrot.lane.b32.xlu2 %v2462_v57, %s2127_s23  ;;  %1648 = vmatpush.msra.mxu0 %v1627_v27  ;;  %v1625_v57 = vld [vmem:[%s3145_s2 + $0x18] sm:$0xff] }
 0x197   : > { %v1059_v33 = vpop.permute.xlu1 %1058  ;;  %v1057_v54 = vpop.permute.xlu0 %1056  ;;  %2010 = vmatpush.msra.mxu2 %v1628_v61  ;;  %2012 = vmatpush.msra.mxu1 %v1627_v27 }
 0x198   : > { %1118 = vst.msk [vmem:[#allocation2 + $0x20] sm:$0xff] %vm1113_vm11, %v1059_v33  ;;  %v1079_v8 = vpop.permute.xlu2 %1078  ;;  %1649 = vmatpush.msra.mxu0 %v1626_v36  ;;  %2011 = vmatpush.msra.mxu3 %v1628_v61  ;;  %v1177_v61 = vld [vmem:[%s2195_s28 + $0xb0] sm:$0xff]  ;;  %v1566_v33 = vld [vmem:[%s2310_s10 + $0x20] sm:$0xff] }
 0x199   : > { %1117 = vst.msk [vmem:[#allocation2 + $0x18] sm:$0xff] %vm1113_vm11, %v1057_v54  ;;  %2013 = vmatpush.msra.mxu2 %v1627_v27  ;;  %2015 = vmatpush.msra.mxu1 %v1626_v36 }
 0x19a   : > { %1128 = vst.msk [vmem:[#allocation2 + $0x70] sm:$0xff] %vm1113_vm11, %v1079_v8  ;;  %1650 = vmatpush.msra.mxu0 %v1625_v57  ;;  %2014 = vmatpush.msra.mxu3 %v1627_v27  ;;  %v1316_v27 = vld [vmem:[%s2195_s28 + $0x81] sm:$0xff] }
 0x19b   : > { %2016 = vmatpush.msra.mxu2 %v1626_v36  ;;  %2018 = vmatpush.msra.mxu1 %v1625_v57 }
 0x19c   : > { %1651 = vmatpush.msra.mxu0 %v1624_v37  ;;  %2017 = vmatpush.msra.mxu3 %v1626_v36 }
 0x19d   : > { %1090 = vrot.lane.b32.xlu1 %v1028_v35, %s2125_s14  ;;  %1213 = vrot.lane.b32.xlu0 %v2472_v60, %s2127_s23  ;;  %v1322_v35 = vld [vmem:[%s2195_s28 + $0xb1] sm:$0xff] }
 0x19e   : > { %1144 = vrot.lane.b32.xlu2 %v2620_v62, %s2125_s14  ;;  %1652 = vmatpush.msra.mxu0 %v1623_v40 }
 0x19f   : > { %v1065_v30 = vpop.permute.xlu1 %1064  ;;  %v1063_v10 = vpop.permute.xlu0 %1062  ;;  %2019 = vmatpush.msra.mxu2 %v1625_v57  ;;  %2021 = vmatpush.msra.mxu1 %v1624_v37 }
 0x1a0   : > { %1121 = vst.msk [vmem:[#allocation2 + $0x38] sm:$0xff] %vm1113_vm11, %v1065_v30  ;;  %v1489_v60 = vpop.permute.xlu2 %1488  ;;  %1653 = vmatpush.msra.mxu0 %v1622_v48  ;;  %2020 = vmatpush.msra.mxu3 %v1625_v57  ;;  %v1462_v57 = vld [vmem:[%s2195_s28 + $0x82] sm:$0xff] }
 0x1a1   : > { %1120 = vst.msk [vmem:[#allocation2 + $0x30] sm:$0xff] %vm1113_vm11, %v1063_v10  ;;  %2022 = vmatpush.msra.mxu2 %v1624_v37  ;;  %2024 = vmatpush.msra.mxu1 %v1623_v40  ;;  %v1468_v10 = vld [vmem:[%s2195_s28 + $0xb2] sm:$0xff] }
 0x1a2   : > { %2023 = vmatpush.msra.mxu3 %v1624_v37 }
 0x1a3   : > { %2025 = vmatpush.msra.mxu2 %v1623_v40  ;;  %2027 = vmatpush.msra.mxu1 %v1622_v48 }
 0x1a4   : > { %2026 = vmatpush.msra.mxu3 %v1623_v40 }
 0x1a5   : > { %1358 = vrot.lane.b32.xlu1 %v1314_v47, %s2126_s22  ;;  %1348 = vrot.lane.b32.xlu0 %v1309_v51, %s2126_s22 }
 0x1a6   : > { %2028 = vmatpush.msra.mxu2 %v1622_v48  ;;  %1225 = vrot.lane.b32.xlu2 %v2532_v56, %s2127_s23 }
 0x1a7   : > { %v1071_v62 = vpop.permute.xlu1 %1070  ;;  %v1069_v59 = vpop.permute.xlu0 %1068  ;;  %2029 = vmatpush.msra.mxu3 %v1622_v48 }
 0x1a8   : > { %1124 = vst.msk [vmem:[#allocation2 + $0x50] sm:$0xff] %vm1113_vm11, %v1071_v62  ;;  %v1345_v7 = vpop.permute.xlu2 %1344 }
 0x1a9   : > { %1123 = vst.msk [vmem:[#allocation2 + $0x48] sm:$0xff] %vm1113_vm11, %v1069_v59 }
 0x1ad   : > { %1494 = vrot.lane.b32.xlu1 %v1455_v53, %s2128_s24  ;;  %1286 = vrot.lane.b32.xlu0 %v2630_v28, %s2127_s23 }
 0x1ae   : > { %1504 = vrot.lane.b32.xlu2 %v1460_v32, %s2128_s24 }
 0x1af   : > { %v1077_v4 = vpop.permute.xlu1 %1076  ;;  %v1075_v56 = vpop.permute.xlu0 %1074 }
 0x1b0   : > { %1127 = vst.msk [vmem:[#allocation2 + $0x68] sm:$0xff] %vm1113_vm11, %v1077_v4  ;;  %v1491_v52 = vpop.permute.xlu2 %1490 }
 0x1b1   : > { %1126 = vst.msk [vmem:[#allocation2 + $0x60] sm:$0xff] %vm1113_vm11, %v1075_v56  ;;  %v1469_v56 = vld [vmem:[%s2195_s28 + $0xba] sm:$0x3f] }
 0x1b5   : > { %1432 = vrot.lane.b32.xlu1 %v2630_v28, %s2126_s22  ;;  %1370 = vrot.lane.b32.xlu0 %v1320_v6, %s2126_s22  ;;  %v1172_v6 = vld [vmem:[%s2195_s28 + $0x88] sm:$0xff] }
 0x1b6   : > { %1516 = vrot.lane.b32.xlu2 %v1466_v31, %s2128_s24 }
 0x1b7   : > { %v1343_v13 = vpop.permute.xlu1 %1342  ;;  %v1198_v34 = vpop.permute.xlu0 %1197 }
 0x1b8   : > { %1252 = vst.msk [vmem:[#allocation2] sm:$0xff] %vm1251_vm13, %v1198_v34  ;;  %v1513_v19 = vpop.permute.xlu2 %1512 }
 0x1b9   : > { %1397 = vst.msk [vmem:[#allocation2] sm:$0xff] %vm1396_vm14, %v1343_v13 }
 0x1ba   : > { %1543 = vst.msk [vmem:[#allocation2] sm:$0xff] %vm1542_vm15, %v1489_v60  ;;  %v1139_v60 = vld [vmem:[%s2310_s10 + $0x18] sm:$0x3] }
 0x1bd   : > { %1205 = vrot.lane.b32.xlu1 %v2457_v55, %s2127_s23  ;;  %1578 = vrot.lane.b32.xlu0 %v2630_v28, %s2128_s24  ;;  %v1310_v55 = vld [vmem:[%s2195_s28 + $0x51] sm:$0xff] }
 0x1be   : > { %1215 = vrot.lane.b32.xlu2 %v1170_v39, %s2127_s23  ;;  %v1311_v39 = vld [vmem:[%s2195_s28 + $0x59] sm:$0xff] }
 0x1bf   : > { %v1210_v58 = vpop.permute.xlu1 %1209  ;;  %v1200_v9 = vpop.permute.xlu0 %1199 }
 0x1c0   : > { %1258 = vst.msk [vmem:[#allocation2 + $0x30] sm:$0xff] %vm1251_vm13, %v1210_v58  ;;  %v1085_v0 = vpop.permute.xlu2 %1084  ;;  %v1317_v58 = vld [vmem:[%s2195_s28 + $0x89] sm:$0xff] }
 0x1c1   : > { %1253 = vst.msk [vmem:[#allocation2 + $0x8] sm:$0xff] %vm1251_vm13, %v1200_v9  ;;  %v1598_v50 = vld [vmem:[#allocation2] sm:$0xff] }
 0x1c2   : > { %1398 = vst.msk [vmem:[#allocation2 + $0x8] sm:$0xff] %vm1396_vm14, %v1345_v7  ;;  %1654 = vmatmul.f32.vlgmr.msra.gmra.mxu0 %v1598_v50  ;;  %v1275_v7 = vld [vmem:[%s2310_s10 + $0x28] sm:$0xff]  ;;  %v1457_v9 = vld [vmem:[%s2195_s28 + $0x5a] sm:$0xff] }
 0x1c3   : > { %1544 = vst.msk [vmem:[#allocation2 + $0x8] sm:$0xff] %vm1542_vm15, %v1491_v52  ;;  %v1166_v52 = vld [vmem:[%s2195_s28 + $0x58] sm:$0xff] }
 0x1c4   : > { %1131 = vst.msk [vmem:[#allocation2 + $0x88] sm:$0xff] %vm1113_vm11, %v1085_v0 }
 0x1c5   : > { %1146 = vrot.lane.b32.xlu1 %v2633_v46, %s2125_s14  ;;  %1080 = vrot.lane.b32.xlu0 %v1023_v24, %s2125_s14  ;;  %v1419_v46 = vld [vmem:[%s2310_s10 + $0x18] sm:$0xff] }
 0x1c6   : > { %1350 = vrot.lane.b32.xlu2 %v1310_v55, %s2126_s22  ;;  %v1463_v55 = vld [vmem:[%s2195_s28 + $0x8a] sm:$0xff] }
 0x1c7   : > { %v1222_v28 = vpop.permute.xlu1 %1221  ;;  %v1355_v11 = vpop.permute.xlu0 %1354 }
 0x1c8   : > { %1264 = vst.msk [vmem:[#allocation2 + $0x60] sm:$0xff] %vm1251_vm13, %v1222_v28  ;;  %v1347_v26 = vpop.permute.xlu2 %1346 }
 0x1c9   : > { %1403 = vst.msk [vmem:[#allocation2 + $0x30] sm:$0xff] %vm1396_vm14, %v1355_v11 }
 0x1ca   : > { %v1599_v23 = vld [vmem:[#allocation2 + $0x8] sm:$0xff] }
 0x1cb   : > { %1657 = vmatmul.f32.gmra.mxu0 %v1599_v23 }
 0x1cd   : > { %1227 = vrot.lane.b32.xlu1 %v2571_v63, %s2127_s23  ;;  %1360 = vrot.lane.b32.xlu0 %v1315_v44, %s2126_s22  ;;  %v1321_v63 = vld [vmem:[%s2195_s28 + $0xa9] sm:$0xff]  ;;  %s1968_s28 = sshll.u32 %s2102_s15, 3  ;;  %s3167_s15 = smov (!%p324_p9, %s2102_s15), 1 }
 0x1ce   : > { %1288 = vrot.lane.b32.xlu2 %v1419_v46, %s2127_s23  ;;  %p314_p8 = scmp.lt.s32.totalorder %s1968_s28, 15  ;;  %s327_s9 = sadd.s32 %s1972_s8, %s3167_s15 }
 0x1cf   : > { %v1367_v14 = vpop.permute.xlu1 %1366  ;;  %v1501_v1 = vpop.permute.xlu0 %1500  ;;  %s1973_s11 = sshll.u32 %s327_s9, 1 }
 0x1d0   : > { %1409 = vst.msk [vmem:[#allocation2 + $0x60] sm:$0xff] %vm1396_vm14, %v1367_v14  ;;  %v1232_v42 = vpop.permute.xlu2 %1231  ;;  %s3165_s28 = smov (!%p314_p8, %s1968_s28), 15  ;;  %s329_s25 = scalar_lea.vmem %s3147_s4, %s1973_s11 }
 0x1d1   : > { %1549 = vst.msk [vmem:[#allocation2 + $0x30] sm:$0xff] %vm1542_vm15, %v1501_v1  ;;  %s1969_s10 = sshll.u32 %s3165_s28, 1 }
 0x1d2   : > { %1555 = vst.msk [vmem:[#allocation2 + $0x60] sm:$0xff] %vm1542_vm15, %v1513_v19 }
 0x1d3   : > { %1269 = vst.msk [vmem:[#allocation2 + $0x88] sm:$0xff] %vm1251_vm13, %v1232_v42 }
 0x1d5   : > { %1506 = vrot.lane.b32.xlu1 %v1461_v12, %s2128_s24  ;;  %1496 = vrot.lane.b32.xlu0 %v1456_v16, %s2128_s24 }
 0x1d6   : > { %1372 = vrot.lane.b32.xlu2 %v1321_v63, %s2126_s22 }
 0x1d7   : > { %v1212_v15 = vpop.permute.xlu1 %1211  ;;  %v1202_v17 = vpop.permute.xlu0 %1201 }
 0x1d8   : > { %1259 = vst.msk [vmem:[#allocation2 + $0x38] sm:$0xff] %vm1251_vm13, %v1212_v15  ;;  %v1604_v49 = vld [vmem:[#allocation2 + $0x30] sm:$0xff]  ;;  %v1493_v18 = vpop.permute.xlu2 %1492 }
 0x1d9   : > { %1254 = vst.msk [vmem:[#allocation2 + $0x10] sm:$0xff] %vm1251_vm13, %v1202_v17  ;;  %1670 = vmatmul.f32.vlgmr.msra.gmra.mxu1 %v1604_v49  ;;  %v1610_v43 = vld [vmem:[#allocation2 + $0x60] sm:$0xff] }
 0x1da   : > { %1686 = vmatmul.f32.vlgmr.msra.gmra.mxu2 %v1610_v43  ;;  %1399 = vst.msk [vmem:[#allocation2 + $0x10] sm:$0xff] %vm1396_vm14, %v1347_v26 }
 0x1db   : > { %1545 = vst.msk [vmem:[#allocation2 + $0x10] sm:$0xff] %vm1542_vm15, %v1493_v18 }
 0x1dd   : > { %1518 = vrot.lane.b32.xlu1 %v1467_v20, %s2128_s24  ;;  %1434 = vrot.lane.b32.xlu0 %v1419_v46, %s2126_s22 }
 0x1de   : > { %1580 = vrot.lane.b32.xlu2 %v1419_v46, %s2128_s24 }
 0x1df   : > { %v1089_v22 = vpop.permute.xlu1 %1088  ;;  %v1087_v41 = vpop.permute.xlu0 %1086 }
 0x1e0   : > { %1133 = vst.msk [vmem:[#allocation2 + $0x98] sm:$0xff] %vm1113_vm11, %v1089_v22  ;;  %v1377_v25 = vpop.permute.xlu2 %1376 }
 0x1e1   : > { %1132 = vst.msk [vmem:[#allocation2 + $0x90] sm:$0xff] %vm1113_vm11, %v1087_v41 }
 0x1e2   : > { %1415 = vst.msk [vmem:[#allocation2 + $0x88] sm:$0x7f] %vm1414_vm0, %v1377_v25  ;;  %v1600_v45 = vld [vmem:[#allocation2 + $0x10] sm:$0xff] }
 0x1e3   : > { %1660 = vmatmul.f32.gmra.mxu0 %v1600_v45 }
 0x1e5   : > { %1082 = vrot.lane.b32.xlu1 %v1024_v21, %s2125_s14  ;;  %1217 = vrot.lane.b32.xlu0 %v1171_v38, %s2127_s23 }
 0x1e6   : > { %1148 = vrot.lane.b32.xlu2 %v1138_v3, %s2125_s14 }
 0x1e7   : > { %v1224_v5 = vpop.permute.xlu1 %1223  ;;  %v1357_v2 = vpop.permute.xlu0 %1356 }
 0x1e8   : > { %1265 = vst.msk [vmem:[#allocation2 + $0x68] sm:$0xff] %vm1251_vm13, %v1224_v5  ;;  %v1515_v29 = vpop.permute.xlu2 %1514 }
 0x1e9   : > { %1404 = vst.msk [vmem:[#allocation2 + $0x38] sm:$0xff] %vm1396_vm14, %v1357_v2 }
 0x1ed   : > { %1229 = vrot.lane.b32.xlu1 %v1177_v61, %s2127_s23  ;;  %1362 = vrot.lane.b32.xlu0 %v1316_v27, %s2126_s22 }
 0x1ee   : > { %1290 = vrot.lane.b32.xlu2 %v1566_v33, %s2127_s23 }
 0x1ef   : > { %v1285_v54 = vpop.permute.xlu1 %1284  ;;  %v1283_v8 = vpop.permute.xlu0 %1282 }
 0x1f0   : > { %1301 = vst.msk [vmem:[#allocation2 + $0x98] sm:$0xff] %vm1251_vm13, %v1285_v54  ;;  %v1204_v36 = vpop.permute.xlu2 %1203 }
 0x1f1   : > { %1300 = vst.msk [vmem:[#allocation2 + $0x90] sm:$0xff] %vm1251_vm13, %v1283_v8 }
 0x1f2   : > { %1255 = vst.msk [vmem:[#allocation2 + $0x18] sm:$0xff] %vm1251_vm13, %v1204_v36 }
 0x1f5   : > { %1374 = vrot.lane.b32.xlu1 %v1322_v35, %s2126_s22  ;;  %1508 = vrot.lane.b32.xlu0 %v1462_v57, %s2128_s24 }
 0x1f6   : > { %1436 = vrot.lane.b32.xlu2 %v1566_v33, %s2126_s22 }
 0x1f7   : > { %v1369_v37 = vpop.permute.xlu1 %1368  ;;  %v1503_v40 = vpop.permute.xlu0 %1502 }
 0x1f8   : > { %1410 = vst.msk [vmem:[#allocation2 + $0x68] sm:$0xff] %vm1396_vm14, %v1369_v37  ;;  %v1145_v30 = vpop.permute.xlu2 %1144 }
 0x1f9   : > { %1550 = vst.msk [vmem:[#allocation2 + $0x38] sm:$0xff] %vm1542_vm15, %v1503_v40 }
 0x1fa   : > { %1556 = vst.msk [vmem:[#allocation2 + $0x68] sm:$0xff] %vm1542_vm15, %v1515_v29 }
 0x1fb   : > { %1156 = vst.msk [vmem:[#allocation2 + $0xa6] sm:$0xff] %vm1113_vm11, %v1145_v30 }
 0x1fd   : > { %1582 = vrot.lane.b32.xlu1 %v1566_v33, %s2128_s24  ;;  %1520 = vrot.lane.b32.xlu0 %v1468_v10, %s2128_s24 }
 0x1fe   : > { %1150 = vrot.lane.b32.xlu2 %v1139_v60, %s2125_s14  ;;  %s1970_s14 = sshll.u32 %s3159_s16, 5 }
 0x1ff   : > { %v1431_v48 = vpop.permute.xlu1 %1430  ;;  %v1429_v47 = vpop.permute.xlu0 %1428 }
 0x200   : > { %1447 = vst.msk [vmem:[#allocation2 + $0x97] sm:$0xff] %vm1396_vm14, %v1431_v48  ;;  %v1605_v51 = vld [vmem:[#allocation2 + $0x38] sm:$0xff]  ;;  %v1226_v59 = vpop.permute.xlu2 %1225 }
 0x201   : > { %1446 = vst.msk [vmem:[#allocation2 + $0x8f] sm:$0xff] %vm1396_vm14, %v1429_v47  ;;  %1673 = vmatmul.f32.gmra.mxu1 %v1605_v51  ;;  %v1611_v62 = vld [vmem:[#allocation2 + $0x68] sm:$0xff] }
 0x202   : > { %1689 = vmatmul.f32.gmra.mxu2 %v1611_v62  ;;  %1266 = vst.msk [vmem:[#allocation2 + $0x70] sm:$0xff] %vm1251_vm13, %v1226_v59 }
 0x205   : > { %1292 = vrot.lane.b32.xlu0 %v1275_v7, %s2127_s23  ;;  %1438 = vrot.lane.b32.xlu1 %v1275_v7, %s2126_s22 }
 0x206   : > { %1584 = vrot.lane.b32.xlu2 %v1275_v7, %s2128_s24 }
 0x207   : > { %v1577_v53 = vpop.permute.xlu1 %1576  ;;  %v1575_v32 = vpop.permute.xlu0 %1574 }
 0x208   : > { %1593 = vst.msk [vmem:[#allocation2 + $0x96] sm:$0xff] %vm1542_vm15, %v1577_v53  ;;  %v1505_v4 = vpop.permute.xlu2 %1504 }
 0x209   : > { %1592 = vst.msk [vmem:[#allocation2 + $0x8e] sm:$0xff] %vm1542_vm15, %v1575_v32 }
 0x20d   : > { %1522 = vrot.lane.b32.xlu0 %v1469_v56, %s2128_s24  ;;  %1207 = vrot.lane.b32.xlu1 %v1166_v52, %s2127_s23 }
 0x20e   : > { %1219 = vrot.lane.b32.xlu2 %v1172_v6, %s2127_s23 }
 0x20f   : > { %v1091_v31 = vpop.permute.xlu1 %1090  ;;  %v1214_v13 = vpop.permute.xlu0 %1213 }
 0x210   : > { %1135 = vst.msk [vmem:[#allocation2 + $0xa0] sm:$0x3f] %vm1134_vm1, %v1091_v31  ;;  %v1616_v34 = vld [vmem:[#allocation2 + $0x90] sm:$0xff]  ;;  %v1517_v19 = vpop.permute.xlu2 %1516 }
 0x211   : > { %1260 = vst.msk [vmem:[#allocation2 + $0x40] sm:$0xff] %vm1251_vm13, %v1214_v13  ;;  %1702 = vmatmul.f32.vlgmr.msra.gmra.mxu3 %v1616_v34 }
 0x215   : > { %1352 = vrot.lane.b32.xlu0 %v1311_v39, %s2126_s22  ;;  %1364 = vrot.lane.b32.xlu1 %v1317_v58, %s2126_s22  ;;  %s318_s22 = sadd.s32 %s1970_s14, %s1969_s10 }
 0x216   : > { %1498 = vrot.lane.b32.xlu2 %v1457_v9, %s2128_s24  ;;  %s1971_s23 = sshll.u32 %s318_s22, 3 }
 0x217   : > { %v1359_v50 = vpop.permute.xlu1 %1358  ;;  %v1349_v0 = vpop.permute.xlu0 %1348  ;;  %s3058_s7 = scalar_lea.vmem %s3146_s3, %s1971_s23 }
 0x218   : > { %1405 = vst.msk [vmem:[#allocation2 + $0x40] sm:$0xff] %vm1396_vm14, %v1359_v50  ;;  %v1216_v24 = vpop.permute.xlu2 %1215 }
 0x219   : > { %1400 = vst.msk [vmem:[#allocation2 + $0x18] sm:$0xff] %vm1396_vm14, %v1349_v0 }
 0x21a   : > { %1551 = vst.msk [vmem:[#allocation2 + $0x40] sm:$0xff] %vm1542_vm15, %v1505_v4 }
 0x21b   : > { %1261 = vst.msk [vmem:[#allocation2 + $0x48] sm:$0xff] %vm1251_vm13, %v1216_v24 }
 0x21d   : > { %1510 = vrot.lane.b32.xlu0 %v1463_v55, %s2128_s24 }
 0x21f   : > { %v1495_v28 = vpop.permute.xlu1 %1494  ;;  %v1287_v11 = vpop.permute.xlu0 %1286 }
 0x220   : > { %1546 = vst.msk [vmem:[#allocation2 + $0x18] sm:$0xff] %vm1542_vm15, %v1495_v28  ;;  %v1351_v23 = vpop.permute.xlu2 %1350 }
 0x221   : > { %1302 = vst.msk [vmem:[#allocation2 + $0xa0] sm:$0xff] %vm1251_vm13, %v1287_v11  ;;  %v1606_v26 = vld [vmem:[#allocation2 + $0x40] sm:$0xff] }
 0x222   : > { %1676 = vmatmul.f32.gmra.mxu1 %v1606_v26 }
 0x227   : > { %v1433_v44 = vpop.permute.xlu1 %1432  ;;  %v1371_v46 = vpop.permute.xlu0 %1370  ;;  %v1601_v14 = vld [vmem:[#allocation2 + $0x18] sm:$0xff] }
 0x228   : > { %1448 = vst.msk [vmem:[#allocation2 + $0x9f] sm:$0xff] %vm1396_vm14, %v1433_v44  ;;  %1662 = vmatmul.f32.gmra.mxu0 %v1601_v14  ;;  %v1289_v1 = vpop.permute.xlu2 %1288 }
 0x229   : > { %1411 = vst.msk [vmem:[#allocation2 + $0x70] sm:$0xff] %vm1396_vm14, %v1371_v46 }
 0x22a   : > { %1557 = vst.msk [vmem:[#allocation2 + $0x70] sm:$0xff] %vm1542_vm15, %v1517_v19 }
 0x22f   : > { %v1206_v42 = vpop.permute.xlu1 %1205  ;;  %v1579_v12 = vpop.permute.xlu0 %1578 }
 0x230   : > { %1256 = vst.msk [vmem:[#allocation2 + $0x20] sm:$0xff] %vm1251_vm13, %v1206_v42  ;;  %v1373_v63 = vpop.permute.xlu2 %1372 }
 0x231   : > { %1594 = vst.msk [vmem:[#allocation2 + $0x9e] sm:$0xff] %vm1542_vm15, %v1579_v12  ;;  %v1612_v16 = vld [vmem:[#allocation2 + $0x70] sm:$0xff] }
 0x232   : > { %1692 = vmatmul.f32.gmra.mxu2 %v1612_v16  ;;  %1401 = vst.msk [vmem:[#allocation2 + $0x20] sm:$0xff] %vm1396_vm14, %v1351_v23 }
 0x237   : > { %v1147_v15 = vpop.permute.xlu1 %1146  ;;  %v1081_v17 = vpop.permute.xlu0 %1080 }
 0x238   : > { %1157 = vst.msk [vmem:[#allocation2 + $0xae] sm:$0xff] %vm1113_vm11, %v1147_v15  ;;  %v1617_v49 = vld [vmem:[#allocation2 + $0x98] sm:$0xff]  ;;  %v1581_v43 = vpop.permute.xlu2 %1580 }
 0x239   : > { %1129 = vst.msk [vmem:[#allocation2 + $0x78] sm:$0xff] %vm1113_vm11, %v1081_v17  ;;  %1705 = vmatmul.f32.gmra.mxu3 %v1617_v49 }
 0x23a   : > { %1303 = vst.msk [vmem:[#allocation2 + $0xa8] sm:$0xff] %vm1251_vm13, %v1289_v1 }
 0x23f   : > { %v1228_v18 = vpop.permute.xlu1 %1227  ;;  %v1361_v20 = vpop.permute.xlu0 %1360 }
 0x240   : > { %1267 = vst.msk [vmem:[#allocation2 + $0x78] sm:$0xff] %vm1251_vm13, %v1228_v18  ;;  %v1655_v22 = vpop.f32.mrf.mxu0  ;;  %v1149_v41 = vpop.permute.xlu2 %1148 }
 0x241   : > { %1406 = vst.msk [vmem:[#allocation2 + $0x48] sm:$0xff] %vm1396_vm14, %v1361_v20  ;;  %v1756_v45 = vmul.f32 %v1655_v22, %v1655_v22 }
 0x242   : > { %1719 = vst [vmem:[%s3058_s7] sm:$0xff] %v1655_v22 }
 0x243   : > { %1412 = vst.msk [vmem:[#allocation2 + $0x78] sm:$0xff] %vm1396_vm14, %v1373_v63 }
 0x244   : > { %1158 = vst.msk [vmem:[#allocation2 + $0xb6] sm:$0xff] %vm1113_vm11, %v1149_v41 }
 0x247   : > { %v1507_v25 = vpop.permute.xlu1 %1506  ;;  %v1497_v21 = vpop.permute.xlu0 %1496 }
 0x248   : > { %1552 = vst.msk [vmem:[#allocation2 + $0x48] sm:$0xff] %vm1542_vm15, %v1507_v25  ;;  %v1658_v38 = vpop.f32.mrf.mxu0  ;;  %v1291_v2 = vpop.permute.xlu2 %1290 }
 0x249   : > { %1547 = vst.msk [vmem:[#allocation2 + $0x20] sm:$0xff] %vm1542_vm15, %v1497_v21  ;;  %v3067_v3 = vadd.f32 %v1658_v38, %v1655_v22  ;;  %v1757_v5 = vmul.f32 %v1658_v38, %v1658_v38 }
 0x24a   : > { %1720 = vst [vmem:[%s3058_s7 + $0x8] sm:$0xff] %v1658_v38 }
 0x24b   : > { %v3070_v29 = vadd.f32 %v1757_v5, %v1756_v45  ;;  %1304 = vst.msk [vmem:[#allocation2 + $0xb0] sm:$0xff] %vm1251_vm13, %v1291_v2 }
 0x24f   : > { %v1519_v61 = vpop.permute.xlu1 %1518  ;;  %v1435_v27 = vpop.permute.xlu0 %1434  ;;  %v1607_v33 = vld [vmem:[#allocation2 + $0x48] sm:$0xff] }
 0x250   : > { %1558 = vst.msk [vmem:[#allocation2 + $0x78] sm:$0xff] %vm1542_vm15, %v1519_v61  ;;  %v1602_v54 = vld [vmem:[#allocation2 + $0x20] sm:$0xff]  ;;  %1678 = vmatmul.f32.gmra.mxu1 %v1607_v33  ;;  %v1437_v8 = vpop.permute.xlu2 %1436 }
 0x251   : > { %1449 = vst.msk [vmem:[#allocation2 + $0xa7] sm:$0xff] %vm1396_vm14, %v1435_v27  ;;  %1665 = vmatmul.f32.gmra.mxu0 %v1602_v54 }
 0x252   : > { %1595 = vst.msk [vmem:[#allocation2 + $0xa6] sm:$0xff] %vm1542_vm15, %v1581_v43 }
 0x253   : > { %1450 = vst.msk [vmem:[#allocation2 + $0xaf] sm:$0xff] %vm1396_vm14, %v1437_v8 }
 0x256   : > { %v3077_v36 = vpop.f32.mrf.mxu1 }
 0x257   : > { %1723 = vst [vmem:[%s3058_s7 + $0x20] sm:$0xff] %v3077_v36  ;;  %v1083_v35 = vpop.permute.xlu1 %1082  ;;  %v1218_v57 = vpop.permute.xlu0 %1217  ;;  %v1613_v37 = vld [vmem:[#allocation2 + $0x78] sm:$0xff]  ;;  %v1760_v22 = vmul.f32 %v3077_v36, %v3077_v36 }
 0x258   : > { %1130 = vst.msk [vmem:[#allocation2 + $0x80] sm:$0xff] %vm1113_vm11, %v1083_v35  ;;  %1694 = vmatmul.f32.gmra.mxu2 %v1613_v37  ;;  %v1151_v30 = vpop.permute.xlu2 %1150 }
 0x259   : > { %1262 = vst.msk [vmem:[#allocation2 + $0x50] sm:$0xff] %vm1251_vm13, %v1218_v57  ;;  %v1618_v40 = vld [vmem:[#allocation2 + $0xa0] sm:$0xff] }
 0x25a   : > { %1708 = vmatmul.f32.gmra.mxu3 %v1618_v40  ;;  %1160 = vst.msk [vmem:[#allocation2 + $0xbe] sm:$0x3] %vm1159_vm2, %v1151_v30 }
 0x25d   : > { %v3083_v10 = vpop.f32.mrf.mxu2 }
 0x25e   : > { %1727 = vst [vmem:[%s3058_s7 + $0x40] sm:$0xff] %v3083_v10  ;;  %v1764_v54 = vmul.f32 %v3083_v10, %v3083_v10 }
 0x25f   : > { %v1230_v60 = vpop.permute.xlu1 %1229  ;;  %v1363_v48 = vpop.permute.xlu0 %1362 }
 0x260   : > { %1268 = vst.msk [vmem:[#allocation2 + $0x80] sm:$0xff] %vm1251_vm13, %v1230_v60  ;;  %v1661_v47 = vpop.f32.mrf.mxu0  ;;  %v1585_v51 = vpop.permute.xlu2 %1584 }
 0x261   : > { %1407 = vst.msk [vmem:[#allocation2 + $0x50] sm:$0xff] %vm1396_vm14, %v1363_v48 }
 0x267   : > { %v1375_v62 = vpop.permute.xlu1 %1374  ;;  %v1509_v59 = vpop.permute.xlu0 %1508 }
 0x268   : > { %1413 = vst.msk [vmem:[#allocation2 + $0x80] sm:$0xff] %vm1396_vm14, %v1375_v62  ;;  %v1220_v7 = vpop.permute.xlu2 %1219 }
 0x269   : > { %1553 = vst.msk [vmem:[#allocation2 + $0x50] sm:$0xff] %vm1542_vm15, %v1509_v59 }
 0x26a   : > { %1263 = vst.msk [vmem:[#allocation2 + $0x58] sm:$0xff] %vm1251_vm13, %v1220_v7 }
 0x26f   : > { %v1583_v53 = vpop.permute.xlu1 %1582  ;;  %v1521_v32 = vpop.permute.xlu0 %1520 }
 0x270   : > { %1596 = vst.msk [vmem:[#allocation2 + $0xae] sm:$0xff] %vm1542_vm15, %v1583_v53  ;;  %v1608_v4 = vld [vmem:[#allocation2 + $0x50] sm:$0xff]  ;;  %v1499_v9 = vpop.permute.xlu2 %1498 }
 0x271   : > { %1559 = vst.msk [vmem:[#allocation2 + $0x80] sm:$0xff] %vm1542_vm15, %v1521_v32  ;;  %1681 = vmatmul.f32.gmra.mxu1 %v1608_v4 }
 0x277   : > { %v1293_v56 = vpop.permute.xlu0 %1292  ;;  %v1439_v52 = vpop.permute.xlu1 %1438  ;;  %v1619_v6 = vld [vmem:[#allocation2 + $0xa8] sm:$0xff] }
 0x278   : > { %1305 = vst.msk [vmem:[#allocation2 + $0xb8] sm:$0xff] %vm1251_vm13, %v1293_v56  ;;  %v1614_v31 = vld [vmem:[#allocation2 + $0x80] sm:$0xff]  ;;  %1710 = vmatmul.f32.gmra.mxu3 %v1619_v6 }
 0x279   : > { %1451 = vst.msk [vmem:[#allocation2 + $0xb7] sm:$0xff] %vm1396_vm14, %v1439_v52  ;;  %1697 = vmatmul.f32.gmra.mxu2 %v1614_v31 }
 0x27a   : > { %1597 = vst.msk [vmem:[#allocation2 + $0xb6] sm:$0xff] %vm1542_vm15, %v1585_v51 }
 0x27e   : > { %v1674_v13 = vpop.f32.mrf.mxu1 }
 0x27f   : > { %1724 = vst [vmem:[%s3058_s7 + $0x28] sm:$0xff] %v1674_v13  ;;  %v1523_v34 = vpop.permute.xlu0 %1522  ;;  %v1208_v19 = vpop.permute.xlu1 %1207  ;;  %v1761_v21 = vmul.f32 %v1674_v13, %v1674_v13 }
 0x280   : > { %1561 = vst.msk [vmem:[#allocation2 + $0x88] sm:$0x3f] %vm1560_vm3, %v1523_v34 }
 0x281   : > { %v1620_v39 = vld [vmem:[#allocation2 + $0xb0] sm:$0xff]  ;;  %1257 = vst.msk [vmem:[#allocation2 + $0x28] sm:$0xff] %vm1251_vm13, %v1208_v19  ;;  %v1621_v55 = vld [vmem:[#allocation2 + $0xb8] sm:$0xff] }
 0x282   : > { %1713 = vmatmul.f32.gmra.mxu3 %v1620_v39 }
 0x285   : > { %v1690_v58 = vpop.f32.mrf.mxu2 }
 0x286   : > { %1728 = vst [vmem:[%s3058_s7 + $0x48] sm:$0xff] %v1690_v58  ;;  %v1765_v35 = vmul.f32 %v1690_v58, %v1690_v58 }
 0x287   : > { %v1615_v50 = vld [vmem:[#allocation2 + $0x88] sm:$0xff]  ;;  %v1353_v0 = vpop.permute.xlu0 %1352  ;;  %v1365_v24 = vpop.permute.xlu1 %1364 }
 0x288   : > { %1700 = vmatmul.f32.gmra.mxu2 %v1615_v50  ;;  %1402 = vst.msk [vmem:[#allocation2 + $0x28] sm:$0xff] %vm1396_vm14, %v1353_v0 }
 0x289   : > { %1408 = vst.msk [vmem:[#allocation2 + $0x58] sm:$0xff] %vm1396_vm14, %v1365_v24 }
 0x28a   : > { %1716 = vmatmul.f32.gmra.mxu3 %v1621_v55  ;;  %1548 = vst.msk [vmem:[#allocation2 + $0x28] sm:$0xff] %vm1542_vm15, %v1499_v9 }
 0x28f   : > { %v1511_v28 = vpop.permute.xlu0 %1510 }
 0x290   : > { %1554 = vst.msk [vmem:[#allocation2 + $0x58] sm:$0xff] %vm1542_vm15, %v1511_v28 }
 0x291   : > { %v1603_v11 = vld [vmem:[#allocation2 + $0x28] sm:$0xff] }
 0x292   : > { %1668 = vmatmul.f32.gmra.mxu0 %v1603_v11 }
 0x294   : > { %v1703_v26 = vpop.f32.mrf.mxu3 }
 0x295   : > { %1731 = vst [vmem:[%s3058_s7 + $0x60] sm:$0xff] %v1703_v26  ;;  %v1768_v59 = vmul.f32 %v1703_v26, %v1703_v26 }
 0x297   : > { %v1609_v23 = vld [vmem:[#allocation2 + $0x58] sm:$0xff] }
 0x298   : > { %1684 = vmatmul.f32.gmra.mxu1 %v1609_v23 }
 0x29f   : > { %v1677_v44 = vpop.f32.mrf.mxu1 }
 0x2a5   : > { %v1663_v46 = vpop.f32.mrf.mxu0 }
 0x2a6   : > { %1721 = vst [vmem:[%s3058_s7 + $0x10] sm:$0xff] %v1663_v46  ;;  %v1736_v14 = vadd.f32 %v3067_v3, %v1663_v46  ;;  %v1758_v1 = vmul.f32 %v1663_v46, %v1663_v46 }
 0x2a8   : > { %v1773_v42 = vadd.f32 %v3070_v29, %v1758_v1 }
 0x2b5   : > { %v1693_v12 = vpop.f32.mrf.mxu2 }
 0x2bc   : > { %v1706_v16 = vpop.f32.mrf.mxu3 }
 0x2bd   : > { %1732 = vst [vmem:[%s3058_s7 + $0x68] sm:$0xff] %v1706_v16 }
 0x2cd   : > { %v1679_v63 = vpop.f32.mrf.mxu1 }
 0x2ce   : > { %v1666_v15 = vpop.f32.mrf.mxu0  ;;  %1725 = vst [vmem:[%s3058_s7 + $0x30] sm:$0xff] %v1679_v63  ;;  %v1762_v5 = vmul.f32 %v1679_v63, %v1679_v63 }
 0x2cf   : > { %1722 = vst [vmem:[%s3058_s7 + $0x18] sm:$0xff] %v1666_v15  ;;  %v1759_v43 = vmul.f32 %v1666_v15, %v1666_v15  ;;  %v1737_v18 = vadd.f32 %v1736_v14, %v1666_v15 }
 0x2d1   : > { %v1774_v20 = vadd.f32 %v1773_v42, %v1759_v43  ;;  %v1738_v41 = vadd.f32 %v1737_v18, %v3077_v36 }
 0x2d3   : > { %v1775_v25 = vadd.f32 %v1774_v20, %v1760_v22  ;;  %v1739_v38 = vadd.f32 %v1738_v41, %v1674_v13 }
 0x2d5   : > { %v1776_v45 = vadd.f32 %v1775_v25, %v1761_v21  ;;  %v1740_v3 = vadd.f32 %v1739_v38, %v1679_v63 }
 0x2d7   : > { %v1777_v29 = vadd.f32 %v1776_v45, %v1762_v5 }
 0x2db   : > { %v1695_v17 = vpop.f32.mrf.mxu2 }
 0x2dc   : > { %1729 = vst [vmem:[%s3058_s7 + $0x50] sm:$0xff] %v1695_v17  ;;  %v1766_v40 = vmul.f32 %v1695_v17, %v1695_v17 }
 0x2dd   : > { %v1709_v49 = vpop.f32.mrf.mxu3 }
 0x2ee   : > { %v1682_v2 = vpop.f32.mrf.mxu1 }
 0x2ef   : > { %1726 = vst [vmem:[%s3058_s7 + $0x38] sm:$0xff] %v1682_v2  ;;  %v1741_v61 = vadd.f32 %v1740_v3, %v1682_v2  ;;  %v1763_v27 = vmul.f32 %v1682_v2, %v1682_v2 }
 0x2f1   : > { %v1778_v33 = vadd.f32 %v1777_v29, %v1763_v27  ;;  %v1742_v8 = vadd.f32 %v1741_v61, %v3083_v10  ;;  %v1769_v10 = vmul.f32 %v1706_v16, %v1706_v16 }
 0x2f3   : > { %v1779_v36 = vadd.f32 %v1778_v33, %v1764_v54  ;;  %v1743_v57 = vadd.f32 %v1742_v8, %v1690_v58 }
 0x2f5   : > { %v1780_v37 = vadd.f32 %v1779_v36, %v1765_v35  ;;  %v1744_v30 = vadd.f32 %v1743_v57, %v1695_v17 }
 0x2f7   : > { %v1781_v62 = vadd.f32 %v1780_v37, %v1766_v40 }
 0x2fb   : > { %v1711_v60 = vpop.f32.mrf.mxu3 }
 0x2fc   : > { %v1698_v48 = vpop.f32.mrf.mxu2  ;;  %1733 = vst [vmem:[%s3058_s7 + $0x70] sm:$0xff] %v1711_v60  ;;  %v1770_v6 = vmul.f32 %v1711_v60, %v1711_v60 }
 0x2fd   : > { %1730 = vst [vmem:[%s3058_s7 + $0x58] sm:$0xff] %v1698_v48  ;;  %v1745_v47 = vadd.f32 %v1744_v30, %v1698_v48  ;;  %v1767_v51 = vmul.f32 %v1698_v48, %v1698_v48 }
 0x2ff   : > { %v1746_v7 = vadd.f32 %v1745_v47, %v1703_v26  ;;  %v1782_v53 = vadd.f32 %v1781_v62, %v1767_v51 }
 0x301   : > { %v1783_v32 = vadd.f32 %v1782_v53, %v1768_v59  ;;  %v1747_v4 = vadd.f32 %v1746_v7, %v1706_v16 }
 0x303   : > { %v1784_v56 = vadd.f32 %v1783_v32, %v1769_v10  ;;  %v1748_v52 = vadd.f32 %v1747_v4, %v1711_v60 }
 0x305   : > { %v1714_v31 = vpop.f32.mrf.mxu3  ;;  %v1785_v13 = vadd.f32 %v1784_v56, %v1770_v6 }
 0x306   : > { %1734 = vst [vmem:[%s3058_s7 + $0x78] sm:$0xff] %v1714_v31  ;;  %v1749_v34 = vadd.f32 %v1748_v52, %v1714_v31  ;;  %v1771_v19 = vmul.f32 %v1714_v31, %v1714_v31 }
 0x308   : > { %v1750_v39 = vrot.slane %v1749_v34, 4  ;;  %v1786_v58 = vadd.f32 %v1785_v13, %v1771_v19 }
 0x30a   : > { %v1751_v9 = vadd.f32 %v1750_v39, %v1749_v34  ;;  %v1787_v50 = vrot.slane %v1786_v58, 4 }
 0x30b   : > { %v1701_v0 = vpop.f32.mrf.mxu2 }
 0x30c   : > { %v1752_v24 = vrot.slane %v1751_v9, 2  ;;  %v1788_v55 = vadd.f32 %v1787_v50, %v1786_v58 }
 0x30d   : > { %v1717_v28 = vpop.f32.mrf.mxu3 }
 0x30e   : > { %v1753_v11 = vadd.f32 %v1752_v24, %v1751_v9  ;;  %v1789_v26 = vrot.slane %v1788_v55, 2 }
 0x30f   : > { %v1669_v23 = vpop.f32.mrf.mxu0 }
 0x310   : > { %v1754_v44 = vrot.slane %v1753_v11, 1  ;;  %v1790_v46 = vadd.f32 %v1789_v26, %v1788_v55 }
 0x312   : > { %v1791_v14 = vrot.slane %v1790_v46, 1  ;;  %v1755_v1 = vadd.f32 %v1754_v44, %v1753_v11 }
 0x314   : > { %v1792_v42 = vadd.f32 %v1791_v14, %v1790_v46 }
 0x315   : > { %v1685_v12 = vpop.f32.mrf.mxu1 }
 0x316   : > { %v1794_v16 = vsel %vm1793_vm4, %v1755_v1, %v1792_v42 }
 0x317   : > { %1795 = vst [vmem:[%s329_s25] sm:$0x3] %v1794_v16 }
 0x318 PF: > { %s15_s19 = sadd.s32 1, %s2118_s19   ;;  %s3148_s15 = smov %s2110_s17 }
 0x319   : > { %p12_p10 = scmp.ge.s32.totalorder %s15_s19, 6   ;;  %s3149_s16 = smov %s2114_s18 }
 0x31a   : > { %s3150_s17 = smov %s3153_s20  ;;  %s3151_s18 = smov %s3157_s21 }
 0x31b   :  { %14 = sbr.rel (!%p12_p10) target bundleno = 3 (0x3), region = 77 }

</bundles_post_ra>
